<compile_context>
chip_gen: v6e
topology: v6e:2x2x1
jax: 0.10.0
libtpu: 0.0.40
codegen_flags: <defaults>
</compile_context>

<pallas_src>
import numpy as np
import jax
import jax.numpy as jnp
from jax.experimental import pallas as pl
from jax.experimental.pallas import tpu as pltpu


# ----------------------------------------------------------------------------
# Pure-python helpers ported verbatim from the PyTorch module (no torch deps).
# ----------------------------------------------------------------------------
def filterRule(rule):
    ans = {}
    for x in rule:
        lst = x.split()
        if len(lst) < 2:
            continue
        ans[x] = len(ans)
    return ans


def getAd(rulead, rule):
    token2id = {}
    for x in rule:
        lst = x.split()
        if len(lst) < 2:
            continue
        token2id.setdefault(lst[0], []).append(rule[x])
    for x in rule:
        lst = x.split()
        idx1 = rule[x]
        for token in lst[2:]:
            if token not in token2id:
                continue
            for y in token2id[token]:
                idx2 = y
                rulead[idx1, idx2] = 1
                rulead[idx2, idx1] = 1
    return


def Get_Em(WordList, voc):
    ans = []
    for x in WordList:
        x = x.lower()
        if x not in voc:
            ans.append(1)
        else:
            ans.append(voc[x])
    return ans


def pad_seq(seq, maxlen):
    if len(seq) < maxlen:
        seq = seq + [0] * maxlen
        seq = seq[:maxlen]
    else:
        seq = seq[:maxlen]
    return seq


def getRulePkl(rule, voc):
    inputrule = []
    for x in rule:
        lst = x.split()
        if len(lst) < 2:
            continue
        inputrule.append(pad_seq(Get_Em(lst, voc), 10))
    return np.array(inputrule)


# ----------------------------------------------------------------------------
# Fused Pallas kernel: conv(1x10) + 9x residual-GCN + LayerNorm
# ----------------------------------------------------------------------------
def _grape_fused_kernel(emb_ref, wf_ref, an_ref, x0_ref, w1_ref, w2_ref,
                        vec_ref, o_ref):
    Rp, E = o_ref.shape

    # ---- hoisted loads / broadcasts (done once, reused by all 9 iterations)
    vecs = vec_ref[...]                                   # [8, E] packed rows
    conv_b = jnp.broadcast_to(vecs[0:1, :], (Rp, E))
    b1     = jnp.broadcast_to(vecs[1:2, :], (Rp, E))
    b2     = jnp.broadcast_to(vecs[2:3, :], (Rp, E))
    g      = jnp.broadcast_to(vecs[3:4, :], (Rp, E))
    beta   = jnp.broadcast_to(vecs[4:5, :], (Rp, E))
    w1 = w1_ref[...]
    a_norm = an_ref[...]                                  # precomputed rownorm(A+I)

    # ---- Conv2d(E, E, (1,10)) == per-rule matmul on the MXU
    child = jnp.dot(emb_ref[...], wf_ref[...],
                    preferred_element_type=jnp.float32) + conv_b
    # loop-invariant projection of childEm
    c_proj = jnp.dot(child, w2_ref[...],
                     preferred_element_type=jnp.float32) + b2

    # ---- 9 refinement iterations, statically unrolled, state kept in vregs
    x = x0_ref[...]
    for _ in range(9):
        h = jnp.dot(x, w1, preferred_element_type=jnp.float32) + b1
        h = jnp.dot(a_norm, h, preferred_element_type=jnp.float32) + c_proj
        h = jnp.maximum(h, 0.0)
        y = x + h
        mu = jnp.mean(y, axis=-1, keepdims=True)
        var = jnp.mean(jnp.square(y - mu), axis=-1, keepdims=True)
        x = (y - mu) * jax.lax.rsqrt(var + 1e-6) * g + beta

    o_ref[...] = x


def _full_spec(shape):
    return pl.BlockSpec(shape, lambda i: (0,) * len(shape))


def grape_pallas(emb_flat, wf_t, a_norm, x0, w1, w2, vecs):
    Rp, E = x0.shape
    KE = emb_flat.shape[1]
    return pl.pallas_call(
        _grape_fused_kernel,
        out_shape=jax.ShapeDtypeStruct((Rp, E), jnp.float32),
        grid=(1,),
        in_specs=[
            _full_spec((Rp, KE)),   # token embeddings, flattened
            _full_spec((KE, E)),    # folded conv weight
            _full_spec((Rp, Rp)),   # row-normalized adjacency (padded)
            _full_spec((Rp, E)),    # id embedding (x0)
            _full_spec((E, E)),     # w1
            _full_spec((E, E)),     # w2
            _full_spec((8, E)),     # packed bias / LN vectors
        ],
        out_specs=_full_spec((Rp, E)),
        compiler_params=pltpu.CompilerParams(
            dimension_semantics=("arbitrary",)),
    )(emb_flat, wf_t, a_norm, x0, w1, w2, vecs)


# ----------------------------------------------------------------------------
# One-time preprocessing (static per grammar / parameter set) + forward glue
# ----------------------------------------------------------------------------
def prepare_grape(params, ruleids, rulead):
    R = ruleids.shape[0]
    E = params["id_emb"].shape[1]
    Rp = ((R + 7) // 8) * 8  # pad rule axis to a sublane multiple

    # childEm token gather -> [R, 10, E] -> [Rp, 10*E]
    child_tok = params["rule_emb"][ruleids]
    emb_flat = child_tok.reshape(R, 10 * E)
    emb_flat = jnp.pad(emb_flat, ((0, Rp - R), (0, 0)))

    # Conv2d(E, E, (1,10)) weight folded to a [10*E, E] matmul operand:
    # Wf[co, k*E+ci] = conv_w[co, ci, 0, k]
    wf = jnp.transpose(params["conv_w"][:, :, 0, :], (0, 2, 1)).reshape(E, 10 * E)
    wf_t = wf.T

    # Row-normalized (A + I), padded with zeros (padded rows/cols inert).
    a = rulead + jnp.eye(R, dtype=jnp.float32)
    a_norm = a / jnp.sum(a, axis=-1, keepdims=True)
    a_norm = jnp.pad(a_norm, ((0, Rp - R), (0, Rp - R)))

    x0 = jnp.pad(params["id_emb"], ((0, Rp - R), (0, 0)))

    # Pack the five (E,) vectors into one sublane-tiled [8, E] block.
    vecs = jnp.zeros((8, E), jnp.float32)
    vecs = vecs.at[0].set(params["conv_b"])
    vecs = vecs.at[1].set(params["b1"])
    vecs = vecs.at[2].set(params["b2"])
    vecs = vecs.at[3].set(params["ln_g"])
    vecs = vecs.at[4].set(params["ln_b"])

    return dict(emb_flat=emb_flat, wf_t=wf_t, a_norm=a_norm, x0=x0,
                w1=params["w1"], w2=params["w2"], vecs=vecs, R=R)


def grape_forward(prep):
    out = grape_pallas(prep["emb_flat"], prep["wf_t"], prep["a_norm"],
                       prep["x0"], prep["w1"], prep["w2"], prep["vecs"])
    return out[:prep["R"]]


def grape_forward_ref(params, ruleids, rulead):
    """Pure-jnp reference for correctness check."""
    R = ruleids.shape[0]
    E = params["id_emb"].shape[1]
    child_tok = params["rule_emb"][ruleids]
    emb_flat = child_tok.reshape(R, 10 * E)
    wf = jnp.transpose(params["conv_w"][:, :, 0, :], (0, 2, 1)).reshape(E, 10 * E)
    c = emb_flat @ wf.T + params["conv_b"]
    a = rulead + jnp.eye(R, dtype=jnp.float32)
    a_norm = a / jnp.sum(a, axis=-1, keepdims=True)
    c_proj = c @ params["w2"] + params["b2"]
    x = params["id_emb"]
    for _ in range(9):
        h = jnp.maximum(a_norm @ (x @ params["w1"] + params["b1"]) + c_proj, 0.0)
        y = x + h
        mu = jnp.mean(y, axis=-1, keepdims=True)
        var = jnp.mean(jnp.square(y - mu), axis=-1, keepdims=True)
        x = (y - mu) * jax.lax.rsqrt(var + 1e-6) * params["ln_g"] + params["ln_b"]
    return x


# ----------------------------------------------------------------------------
if __name__ == "__main__":
    # Small synthetic grammar (stands in for the pickled rule file).
    raw_rules = [
        "root := expr",
        "expr := expr op term",
        "expr := term",
        "term := term mul factor",
        "term := factor",
        "factor := num",
        "factor := lpar expr rpar",
        "op := plus",
        "op := minus",
        "mul := star",
        "num := digit",
        "digit := zero",
        "digit := one",
        "pad",
    ]
    rule = filterRule(raw_rules)
    rulenum = len(rule)                       # R = 13
    rulead_np = np.zeros([rulenum, rulenum])
    getAd(rulead_np, rule)

    voc = {"pad": 0}
    for x in rule:
        lst = x.split()
        if len(lst) < 2:
            continue
        for token in lst:
            if token not in voc:
                voc[token] = len(voc)
    ruleids_np = getRulePkl(rule, voc)        # [R, 10] int

    E = 32                                    # embedding_size
    V = len(voc)

    key = jax.random.PRNGKey(0)
    keys = jax.random.split(key, 8)
    params = {
        "id_emb":   jax.random.normal(keys[0], (rulenum, E), jnp.float32) * 0.1,
        "rule_emb": jax.random.normal(keys[1], (V, E), jnp.float32) * 0.1,
        "conv_w":   jax.random.normal(keys[2], (E, E, 1, 10), jnp.float32) * 0.05,
        "conv_b":   jax.random.normal(keys[3], (E,), jnp.float32) * 0.01,
        "w1":       jax.random.normal(keys[4], (E, E), jnp.float32) * 0.1,
        "b1":       jax.random.normal(keys[5], (E,), jnp.float32) * 0.01,
        "w2":       jax.random.normal(keys[6], (E, E), jnp.float32) * 0.1,
        "b2":       jax.random.normal(keys[7], (E,), jnp.float32) * 0.01,
        "ln_g":     jnp.ones((E,), jnp.float32),
        "ln_b":     jnp.zeros((E,), jnp.float32),
    }

    ruleids = jnp.asarray(ruleids_np, jnp.int32)
    rulead = jnp.asarray(rulead_np, jnp.float32)

    # One-time preprocessing (static per grammar / parameter set).
    prep = prepare_grape(params, ruleids, rulead)
    prep = jax.tree_util.tree_map(
        lambda v: jax.block_until_ready(v) if isinstance(v, jax.Array) else v,
        prep)

    out = grape_forward(prep)
    out = jax.block_until_ready(out)

    ref = grape_forward_ref(params, ruleids, rulead)
    assert out.shape == (rulenum, E)
    assert bool(jnp.all(jnp.isfinite(out)))
    np.testing.assert_allclose(np.asarray(out), np.asarray(ref),
                               rtol=1e-4, atol=1e-4)
    print("KERNEL_OK")
</pallas_src>

<mosaic_0001>
module attributes {stable_mosaic.version = 11 : i64} {
  func.func @_grape_fused_kernel(%arg0: i32, %arg1: memref<16x320xf32, #tpu.memory_space<vmem>>, %arg2: memref<320x32xf32, #tpu.memory_space<vmem>>, %arg3: memref<16x16xf32, #tpu.memory_space<vmem>>, %arg4: memref<16x32xf32, #tpu.memory_space<vmem>>, %arg5: memref<32x32xf32, #tpu.memory_space<vmem>>, %arg6: memref<32x32xf32, #tpu.memory_space<vmem>>, %arg7: memref<8x32xf32, #tpu.memory_space<vmem>>, %arg8: memref<16x32xf32, #tpu.memory_space<vmem>>) attributes {dimension_semantics = [#tpu.dimension_semantics<arbitrary>], iteration_bounds = array<i64: 1>, scalar_prefetch = 0 : i64, scratch_operands = 0 : i64, tpu.core_type = #tpu.core_type<tc>, window_params = [{pipeline_mode = #tpu.pipeline_mode<synchronous>, transform_indices = @transform_0, window_bounds = array<i64: 16, 320>}, {pipeline_mode = #tpu.pipeline_mode<synchronous>, transform_indices = @transform_1, window_bounds = array<i64: 320, 32>}, {pipeline_mode = #tpu.pipeline_mode<synchronous>, transform_indices = @transform_2, window_bounds = array<i64: 16, 16>}, {pipeline_mode = #tpu.pipeline_mode<synchronous>, transform_indices = @transform_3, window_bounds = array<i64: 16, 32>}, {pipeline_mode = #tpu.pipeline_mode<synchronous>, transform_indices = @transform_4, window_bounds = array<i64: 32, 32>}, {pipeline_mode = #tpu.pipeline_mode<synchronous>, transform_indices = @transform_5, window_bounds = array<i64: 32, 32>}, {pipeline_mode = #tpu.pipeline_mode<synchronous>, transform_indices = @transform_6, window_bounds = array<i64: 8, 32>}, {pipeline_mode = #tpu.pipeline_mode<synchronous>, transform_indices = @transform_7, window_bounds = array<i64: 16, 32>}]} {
    %c0 = arith.constant 0 : index
    %c0_0 = arith.constant 0 : index
    %0 = vector.load %arg7[%c0, %c0_0] : memref<8x32xf32, #tpu.memory_space<vmem>>, vector<8x32xf32>
    %1 = vector.extract_strided_slice %0 {offsets = [0, 0], sizes = [1, 32], strides = [1, 1]} : vector<8x32xf32> to vector<1x32xf32>
    %2 = vector.shape_cast %1 : vector<1x32xf32> to vector<1x32xf32>
    %3 = vector.broadcast %2 : vector<1x32xf32> to vector<16x32xf32>
    %4 = vector.extract_strided_slice %0 {offsets = [1, 0], sizes = [1, 32], strides = [1, 1]} : vector<8x32xf32> to vector<1x32xf32>
    %5 = vector.shape_cast %4 : vector<1x32xf32> to vector<1x32xf32>
    %6 = vector.broadcast %5 : vector<1x32xf32> to vector<16x32xf32>
    %7 = vector.extract_strided_slice %0 {offsets = [2, 0], sizes = [1, 32], strides = [1, 1]} : vector<8x32xf32> to vector<1x32xf32>
    %8 = vector.shape_cast %7 : vector<1x32xf32> to vector<1x32xf32>
    %9 = vector.broadcast %8 : vector<1x32xf32> to vector<16x32xf32>
    %10 = vector.extract_strided_slice %0 {offsets = [3, 0], sizes = [1, 32], strides = [1, 1]} : vector<8x32xf32> to vector<1x32xf32>
    %11 = vector.shape_cast %10 : vector<1x32xf32> to vector<1x32xf32>
    %12 = vector.broadcast %11 : vector<1x32xf32> to vector<16x32xf32>
    %13 = vector.extract_strided_slice %0 {offsets = [4, 0], sizes = [1, 32], strides = [1, 1]} : vector<8x32xf32> to vector<1x32xf32>
    %14 = vector.shape_cast %13 : vector<1x32xf32> to vector<1x32xf32>
    %15 = vector.broadcast %14 : vector<1x32xf32> to vector<16x32xf32>
    %c0_1 = arith.constant 0 : index
    %c0_2 = arith.constant 0 : index
    %16 = vector.load %arg5[%c0_1, %c0_2] : memref<32x32xf32, #tpu.memory_space<vmem>>, vector<32x32xf32>
    %c0_3 = arith.constant 0 : index
    %c0_4 = arith.constant 0 : index
    %17 = vector.load %arg3[%c0_3, %c0_4] : memref<16x16xf32, #tpu.memory_space<vmem>>, vector<16x16xf32>
    %c0_5 = arith.constant 0 : index
    %c0_6 = arith.constant 0 : index
    %18 = vector.load %arg1[%c0_5, %c0_6] : memref<16x320xf32, #tpu.memory_space<vmem>>, vector<16x320xf32>
    %c0_7 = arith.constant 0 : index
    %c0_8 = arith.constant 0 : index
    %19 = vector.load %arg2[%c0_7, %c0_8] : memref<320x32xf32, #tpu.memory_space<vmem>>, vector<320x32xf32>
    %cst = arith.constant dense<0.000000e+00> : vector<16x32xf32>
    %20 = tpu.matmul %18, %19, %cst {dimension_numbers = #tpu.dot_dimension_numbers<[1], [0], [0], [1], [0, 0, 1, 1], [], []>} : vector<16x320xf32>, vector<320x32xf32>, vector<16x32xf32> -> vector<16x32xf32>
    %21 = arith.addf %20, %3 : vector<16x32xf32>
    %c0_9 = arith.constant 0 : index
    %c0_10 = arith.constant 0 : index
    %22 = vector.load %arg6[%c0_9, %c0_10] : memref<32x32xf32, #tpu.memory_space<vmem>>, vector<32x32xf32>
    %cst_11 = arith.constant dense<0.000000e+00> : vector<16x32xf32>
    %23 = tpu.matmul %21, %22, %cst_11 {dimension_numbers = #tpu.dot_dimension_numbers<[1], [0], [0], [1], [0, 0, 1, 1], [], []>} : vector<16x32xf32>, vector<32x32xf32>, vector<16x32xf32> -> vector<16x32xf32>
    %24 = arith.addf %23, %9 : vector<16x32xf32>
    %c0_12 = arith.constant 0 : index
    %c0_13 = arith.constant 0 : index
    %25 = vector.load %arg4[%c0_12, %c0_13] : memref<16x32xf32, #tpu.memory_space<vmem>>, vector<16x32xf32>
    %cst_14 = arith.constant dense<0.000000e+00> : vector<16x32xf32>
    %26 = tpu.matmul %25, %16, %cst_14 {dimension_numbers = #tpu.dot_dimension_numbers<[1], [0], [0], [1], [0, 0, 1, 1], [], []>} : vector<16x32xf32>, vector<32x32xf32>, vector<16x32xf32> -> vector<16x32xf32>
    %27 = arith.addf %26, %6 : vector<16x32xf32>
    %cst_15 = arith.constant dense<0.000000e+00> : vector<16x32xf32>
    %28 = tpu.matmul %17, %27, %cst_15 {dimension_numbers = #tpu.dot_dimension_numbers<[1], [0], [0], [1], [0, 0, 1, 1], [], []>} : vector<16x16xf32>, vector<16x32xf32>, vector<16x32xf32> -> vector<16x32xf32>
    %29 = arith.addf %28, %24 : vector<16x32xf32>
    %cst_16 = arith.constant 0.000000e+00 : f32
    %30 = vector.broadcast %cst_16 : f32 to vector<16x32xf32>
    %31 = arith.maximumf %29, %30 : vector<16x32xf32>
    %32 = arith.addf %25, %31 : vector<16x32xf32>
    %cst_17 = arith.constant dense<0.000000e+00> : vector<16xf32>
    %33 = vector.multi_reduction <add>, %32, %cst_17 [1] : vector<16x32xf32> to vector<16xf32>
    %34 = vector.shape_cast %33 : vector<16xf32> to vector<16x1xf32>
    %cst_18 = arith.constant 3.200000e+01 : f32
    %35 = vector.broadcast %cst_18 : f32 to vector<16x1xf32>
    %36 = arith.divf %34, %35 : vector<16x1xf32>
    %37 = vector.broadcast %36 : vector<16x1xf32> to vector<16x32xf32>
    %38 = arith.subf %32, %37 : vector<16x32xf32>
    %39 = arith.mulf %38, %38 : vector<16x32xf32>
    %cst_19 = arith.constant dense<0.000000e+00> : vector<16xf32>
    %40 = vector.multi_reduction <add>, %39, %cst_19 [1] : vector<16x32xf32> to vector<16xf32>
    %41 = vector.shape_cast %40 : vector<16xf32> to vector<16x1xf32>
    %cst_20 = arith.constant 3.200000e+01 : f32
    %42 = vector.broadcast %cst_20 : f32 to vector<16x1xf32>
    %43 = arith.divf %41, %42 : vector<16x1xf32>
    %44 = vector.broadcast %36 : vector<16x1xf32> to vector<16x32xf32>
    %45 = arith.subf %32, %44 : vector<16x32xf32>
    %cst_21 = arith.constant 9.99999997E-7 : f32
    %46 = vector.broadcast %cst_21 : f32 to vector<16x1xf32>
    %47 = arith.addf %43, %46 : vector<16x1xf32>
    %48 = math.rsqrt %47 : vector<16x1xf32>
    %49 = vector.broadcast %48 : vector<16x1xf32> to vector<16x32xf32>
    %50 = arith.mulf %45, %49 : vector<16x32xf32>
    %51 = arith.mulf %50, %12 : vector<16x32xf32>
    %52 = arith.addf %51, %15 : vector<16x32xf32>
    %cst_22 = arith.constant dense<0.000000e+00> : vector<16x32xf32>
    %53 = tpu.matmul %52, %16, %cst_22 {dimension_numbers = #tpu.dot_dimension_numbers<[1], [0], [0], [1], [0, 0, 1, 1], [], []>} : vector<16x32xf32>, vector<32x32xf32>, vector<16x32xf32> -> vector<16x32xf32>
    %54 = arith.addf %53, %6 : vector<16x32xf32>
    %cst_23 = arith.constant dense<0.000000e+00> : vector<16x32xf32>
    %55 = tpu.matmul %17, %54, %cst_23 {dimension_numbers = #tpu.dot_dimension_numbers<[1], [0], [0], [1], [0, 0, 1, 1], [], []>} : vector<16x16xf32>, vector<16x32xf32>, vector<16x32xf32> -> vector<16x32xf32>
    %56 = arith.addf %55, %24 : vector<16x32xf32>
    %cst_24 = arith.constant 0.000000e+00 : f32
    %57 = vector.broadcast %cst_24 : f32 to vector<16x32xf32>
    %58 = arith.maximumf %56, %57 : vector<16x32xf32>
    %59 = arith.addf %52, %58 : vector<16x32xf32>
    %cst_25 = arith.constant dense<0.000000e+00> : vector<16xf32>
    %60 = vector.multi_reduction <add>, %59, %cst_25 [1] : vector<16x32xf32> to vector<16xf32>
    %61 = vector.shape_cast %60 : vector<16xf32> to vector<16x1xf32>
    %cst_26 = arith.constant 3.200000e+01 : f32
    %62 = vector.broadcast %cst_26 : f32 to vector<16x1xf32>
    %63 = arith.divf %61, %62 : vector<16x1xf32>
    %64 = vector.broadcast %63 : vector<16x1xf32> to vector<16x32xf32>
    %65 = arith.subf %59, %64 : vector<16x32xf32>
    %66 = arith.mulf %65, %65 : vector<16x32xf32>
    %cst_27 = arith.constant dense<0.000000e+00> : vector<16xf32>
    %67 = vector.multi_reduction <add>, %66, %cst_27 [1] : vector<16x32xf32> to vector<16xf32>
    %68 = vector.shape_cast %67 : vector<16xf32> to vector<16x1xf32>
    %cst_28 = arith.constant 3.200000e+01 : f32
    %69 = vector.broadcast %cst_28 : f32 to vector<16x1xf32>
    %70 = arith.divf %68, %69 : vector<16x1xf32>
    %71 = vector.broadcast %63 : vector<16x1xf32> to vector<16x32xf32>
    %72 = arith.subf %59, %71 : vector<16x32xf32>
    %cst_29 = arith.constant 9.99999997E-7 : f32
    %73 = vector.broadcast %cst_29 : f32 to vector<16x1xf32>
    %74 = arith.addf %70, %73 : vector<16x1xf32>
    %75 = math.rsqrt %74 : vector<16x1xf32>
    %76 = vector.broadcast %75 : vector<16x1xf32> to vector<16x32xf32>
    %77 = arith.mulf %72, %76 : vector<16x32xf32>
    %78 = arith.mulf %77, %12 : vector<16x32xf32>
    %79 = arith.addf %78, %15 : vector<16x32xf32>
    %cst_30 = arith.constant dense<0.000000e+00> : vector<16x32xf32>
    %80 = tpu.matmul %79, %16, %cst_30 {dimension_numbers = #tpu.dot_dimension_numbers<[1], [0], [0], [1], [0, 0, 1, 1], [], []>} : vector<16x32xf32>, vector<32x32xf32>, vector<16x32xf32> -> vector<16x32xf32>
    %81 = arith.addf %80, %6 : vector<16x32xf32>
    %cst_31 = arith.constant dense<0.000000e+00> : vector<16x32xf32>
    %82 = tpu.matmul %17, %81, %cst_31 {dimension_numbers = #tpu.dot_dimension_numbers<[1], [0], [0], [1], [0, 0, 1, 1], [], []>} : vector<16x16xf32>, vector<16x32xf32>, vector<16x32xf32> -> vector<16x32xf32>
    %83 = arith.addf %82, %24 : vector<16x32xf32>
    %cst_32 = arith.constant 0.000000e+00 : f32
    %84 = vector.broadcast %cst_32 : f32 to vector<16x32xf32>
    %85 = arith.maximumf %83, %84 : vector<16x32xf32>
    %86 = arith.addf %79, %85 : vector<16x32xf32>
    %cst_33 = arith.constant dense<0.000000e+00> : vector<16xf32>
    %87 = vector.multi_reduction <add>, %86, %cst_33 [1] : vector<16x32xf32> to vector<16xf32>
    %88 = vector.shape_cast %87 : vector<16xf32> to vector<16x1xf32>
    %cst_34 = arith.constant 3.200000e+01 : f32
    %89 = vector.broadcast %cst_34 : f32 to vector<16x1xf32>
    %90 = arith.divf %88, %89 : vector<16x1xf32>
    %91 = vector.broadcast %90 : vector<16x1xf32> to vector<16x32xf32>
    %92 = arith.subf %86, %91 : vector<16x32xf32>
    %93 = arith.mulf %92, %92 : vector<16x32xf32>
    %cst_35 = arith.constant dense<0.000000e+00> : vector<16xf32>
    %94 = vector.multi_reduction <add>, %93, %cst_35 [1] : vector<16x32xf32> to vector<16xf32>
    %95 = vector.shape_cast %94 : vector<16xf32> to vector<16x1xf32>
    %cst_36 = arith.constant 3.200000e+01 : f32
    %96 = vector.broadcast %cst_36 : f32 to vector<16x1xf32>
    %97 = arith.divf %95, %96 : vector<16x1xf32>
    %98 = vector.broadcast %90 : vector<16x1xf32> to vector<16x32xf32>
    %99 = arith.subf %86, %98 : vector<16x32xf32>
    %cst_37 = arith.constant 9.99999997E-7 : f32
    %100 = vector.broadcast %cst_37 : f32 to vector<16x1xf32>
    %101 = arith.addf %97, %100 : vector<16x1xf32>
    %102 = math.rsqrt %101 : vector<16x1xf32>
    %103 = vector.broadcast %102 : vector<16x1xf32> to vector<16x32xf32>
    %104 = arith.mulf %99, %103 : vector<16x32xf32>
    %105 = arith.mulf %104, %12 : vector<16x32xf32>
    %106 = arith.addf %105, %15 : vector<16x32xf32>
    %cst_38 = arith.constant dense<0.000000e+00> : vector<16x32xf32>
    %107 = tpu.matmul %106, %16, %cst_38 {dimension_numbers = #tpu.dot_dimension_numbers<[1], [0], [0], [1], [0, 0, 1, 1], [], []>} : vector<16x32xf32>, vector<32x32xf32>, vector<16x32xf32> -> vector<16x32xf32>
    %108 = arith.addf %107, %6 : vector<16x32xf32>
    %cst_39 = arith.constant dense<0.000000e+00> : vector<16x32xf32>
    %109 = tpu.matmul %17, %108, %cst_39 {dimension_numbers = #tpu.dot_dimension_numbers<[1], [0], [0], [1], [0, 0, 1, 1], [], []>} : vector<16x16xf32>, vector<16x32xf32>, vector<16x32xf32> -> vector<16x32xf32>
    %110 = arith.addf %109, %24 : vector<16x32xf32>
    %cst_40 = arith.constant 0.000000e+00 : f32
    %111 = vector.broadcast %cst_40 : f32 to vector<16x32xf32>
    %112 = arith.maximumf %110, %111 : vector<16x32xf32>
    %113 = arith.addf %106, %112 : vector<16x32xf32>
    %cst_41 = arith.constant dense<0.000000e+00> : vector<16xf32>
    %114 = vector.multi_reduction <add>, %113, %cst_41 [1] : vector<16x32xf32> to vector<16xf32>
    %115 = vector.shape_cast %114 : vector<16xf32> to vector<16x1xf32>
    %cst_42 = arith.constant 3.200000e+01 : f32
    %116 = vector.broadcast %cst_42 : f32 to vector<16x1xf32>
    %117 = arith.divf %115, %116 : vector<16x1xf32>
    %118 = vector.broadcast %117 : vector<16x1xf32> to vector<16x32xf32>
    %119 = arith.subf %113, %118 : vector<16x32xf32>
    %120 = arith.mulf %119, %119 : vector<16x32xf32>
    %cst_43 = arith.constant dense<0.000000e+00> : vector<16xf32>
    %121 = vector.multi_reduction <add>, %120, %cst_43 [1] : vector<16x32xf32> to vector<16xf32>
    %122 = vector.shape_cast %121 : vector<16xf32> to vector<16x1xf32>
    %cst_44 = arith.constant 3.200000e+01 : f32
    %123 = vector.broadcast %cst_44 : f32 to vector<16x1xf32>
    %124 = arith.divf %122, %123 : vector<16x1xf32>
    %125 = vector.broadcast %117 : vector<16x1xf32> to vector<16x32xf32>
    %126 = arith.subf %113, %125 : vector<16x32xf32>
    %cst_45 = arith.constant 9.99999997E-7 : f32
    %127 = vector.broadcast %cst_45 : f32 to vector<16x1xf32>
    %128 = arith.addf %124, %127 : vector<16x1xf32>
    %129 = math.rsqrt %128 : vector<16x1xf32>
    %130 = vector.broadcast %129 : vector<16x1xf32> to vector<16x32xf32>
    %131 = arith.mulf %126, %130 : vector<16x32xf32>
    %132 = arith.mulf %131, %12 : vector<16x32xf32>
    %133 = arith.addf %132, %15 : vector<16x32xf32>
    %cst_46 = arith.constant dense<0.000000e+00> : vector<16x32xf32>
    %134 = tpu.matmul %133, %16, %cst_46 {dimension_numbers = #tpu.dot_dimension_numbers<[1], [0], [0], [1], [0, 0, 1, 1], [], []>} : vector<16x32xf32>, vector<32x32xf32>, vector<16x32xf32> -> vector<16x32xf32>
    %135 = arith.addf %134, %6 : vector<16x32xf32>
    %cst_47 = arith.constant dense<0.000000e+00> : vector<16x32xf32>
    %136 = tpu.matmul %17, %135, %cst_47 {dimension_numbers = #tpu.dot_dimension_numbers<[1], [0], [0], [1], [0, 0, 1, 1], [], []>} : vector<16x16xf32>, vector<16x32xf32>, vector<16x32xf32> -> vector<16x32xf32>
    %137 = arith.addf %136, %24 : vector<16x32xf32>
    %cst_48 = arith.constant 0.000000e+00 : f32
    %138 = vector.broadcast %cst_48 : f32 to vector<16x32xf32>
    %139 = arith.maximumf %137, %138 : vector<16x32xf32>
    %140 = arith.addf %133, %139 : vector<16x32xf32>
    %cst_49 = arith.constant dense<0.000000e+00> : vector<16xf32>
    %141 = vector.multi_reduction <add>, %140, %cst_49 [1] : vector<16x32xf32> to vector<16xf32>
    %142 = vector.shape_cast %141 : vector<16xf32> to vector<16x1xf32>
    %cst_50 = arith.constant 3.200000e+01 : f32
    %143 = vector.broadcast %cst_50 : f32 to vector<16x1xf32>
    %144 = arith.divf %142, %143 : vector<16x1xf32>
    %145 = vector.broadcast %144 : vector<16x1xf32> to vector<16x32xf32>
    %146 = arith.subf %140, %145 : vector<16x32xf32>
    %147 = arith.mulf %146, %146 : vector<16x32xf32>
    %cst_51 = arith.constant dense<0.000000e+00> : vector<16xf32>
    %148 = vector.multi_reduction <add>, %147, %cst_51 [1] : vector<16x32xf32> to vector<16xf32>
    %149 = vector.shape_cast %148 : vector<16xf32> to vector<16x1xf32>
    %cst_52 = arith.constant 3.200000e+01 : f32
    %150 = vector.broadcast %cst_52 : f32 to vector<16x1xf32>
    %151 = arith.divf %149, %150 : vector<16x1xf32>
    %152 = vector.broadcast %144 : vector<16x1xf32> to vector<16x32xf32>
    %153 = arith.subf %140, %152 : vector<16x32xf32>
    %cst_53 = arith.constant 9.99999997E-7 : f32
    %154 = vector.broadcast %cst_53 : f32 to vector<16x1xf32>
    %155 = arith.addf %151, %154 : vector<16x1xf32>
    %156 = math.rsqrt %155 : vector<16x1xf32>
    %157 = vector.broadcast %156 : vector<16x1xf32> to vector<16x32xf32>
    %158 = arith.mulf %153, %157 : vector<16x32xf32>
    %159 = arith.mulf %158, %12 : vector<16x32xf32>
    %160 = arith.addf %159, %15 : vector<16x32xf32>
    %cst_54 = arith.constant dense<0.000000e+00> : vector<16x32xf32>
    %161 = tpu.matmul %160, %16, %cst_54 {dimension_numbers = #tpu.dot_dimension_numbers<[1], [0], [0], [1], [0, 0, 1, 1], [], []>} : vector<16x32xf32>, vector<32x32xf32>, vector<16x32xf32> -> vector<16x32xf32>
    %162 = arith.addf %161, %6 : vector<16x32xf32>
    %cst_55 = arith.constant dense<0.000000e+00> : vector<16x32xf32>
    %163 = tpu.matmul %17, %162, %cst_55 {dimension_numbers = #tpu.dot_dimension_numbers<[1], [0], [0], [1], [0, 0, 1, 1], [], []>} : vector<16x16xf32>, vector<16x32xf32>, vector<16x32xf32> -> vector<16x32xf32>
    %164 = arith.addf %163, %24 : vector<16x32xf32>
    %cst_56 = arith.constant 0.000000e+00 : f32
    %165 = vector.broadcast %cst_56 : f32 to vector<16x32xf32>
    %166 = arith.maximumf %164, %165 : vector<16x32xf32>
    %167 = arith.addf %160, %166 : vector<16x32xf32>
    %cst_57 = arith.constant dense<0.000000e+00> : vector<16xf32>
    %168 = vector.multi_reduction <add>, %167, %cst_57 [1] : vector<16x32xf32> to vector<16xf32>
    %169 = vector.shape_cast %168 : vector<16xf32> to vector<16x1xf32>
    %cst_58 = arith.constant 3.200000e+01 : f32
    %170 = vector.broadcast %cst_58 : f32 to vector<16x1xf32>
    %171 = arith.divf %169, %170 : vector<16x1xf32>
    %172 = vector.broadcast %171 : vector<16x1xf32> to vector<16x32xf32>
    %173 = arith.subf %167, %172 : vector<16x32xf32>
    %174 = arith.mulf %173, %173 : vector<16x32xf32>
    %cst_59 = arith.constant dense<0.000000e+00> : vector<16xf32>
    %175 = vector.multi_reduction <add>, %174, %cst_59 [1] : vector<16x32xf32> to vector<16xf32>
    %176 = vector.shape_cast %175 : vector<16xf32> to vector<16x1xf32>
    %cst_60 = arith.constant 3.200000e+01 : f32
    %177 = vector.broadcast %cst_60 : f32 to vector<16x1xf32>
    %178 = arith.divf %176, %177 : vector<16x1xf32>
    %179 = vector.broadcast %171 : vector<16x1xf32> to vector<16x32xf32>
    %180 = arith.subf %167, %179 : vector<16x32xf32>
    %cst_61 = arith.constant 9.99999997E-7 : f32
    %181 = vector.broadcast %cst_61 : f32 to vector<16x1xf32>
    %182 = arith.addf %178, %181 : vector<16x1xf32>
    %183 = math.rsqrt %182 : vector<16x1xf32>
    %184 = vector.broadcast %183 : vector<16x1xf32> to vector<16x32xf32>
    %185 = arith.mulf %180, %184 : vector<16x32xf32>
    %186 = arith.mulf %185, %12 : vector<16x32xf32>
    %187 = arith.addf %186, %15 : vector<16x32xf32>
    %cst_62 = arith.constant dense<0.000000e+00> : vector<16x32xf32>
    %188 = tpu.matmul %187, %16, %cst_62 {dimension_numbers = #tpu.dot_dimension_numbers<[1], [0], [0], [1], [0, 0, 1, 1], [], []>} : vector<16x32xf32>, vector<32x32xf32>, vector<16x32xf32> -> vector<16x32xf32>
    %189 = arith.addf %188, %6 : vector<16x32xf32>
    %cst_63 = arith.constant dense<0.000000e+00> : vector<16x32xf32>
    %190 = tpu.matmul %17, %189, %cst_63 {dimension_numbers = #tpu.dot_dimension_numbers<[1], [0], [0], [1], [0, 0, 1, 1], [], []>} : vector<16x16xf32>, vector<16x32xf32>, vector<16x32xf32> -> vector<16x32xf32>
    %191 = arith.addf %190, %24 : vector<16x32xf32>
    %cst_64 = arith.constant 0.000000e+00 : f32
    %192 = vector.broadcast %cst_64 : f32 to vector<16x32xf32>
    %193 = arith.maximumf %191, %192 : vector<16x32xf32>
    %194 = arith.addf %187, %193 : vector<16x32xf32>
    %cst_65 = arith.constant dense<0.000000e+00> : vector<16xf32>
    %195 = vector.multi_reduction <add>, %194, %cst_65 [1] : vector<16x32xf32> to vector<16xf32>
    %196 = vector.shape_cast %195 : vector<16xf32> to vector<16x1xf32>
    %cst_66 = arith.constant 3.200000e+01 : f32
    %197 = vector.broadcast %cst_66 : f32 to vector<16x1xf32>
    %198 = arith.divf %196, %197 : vector<16x1xf32>
    %199 = vector.broadcast %198 : vector<16x1xf32> to vector<16x32xf32>
    %200 = arith.subf %194, %199 : vector<16x32xf32>
    %201 = arith.mulf %200, %200 : vector<16x32xf32>
    %cst_67 = arith.constant dense<0.000000e+00> : vector<16xf32>
    %202 = vector.multi_reduction <add>, %201, %cst_67 [1] : vector<16x32xf32> to vector<16xf32>
    %203 = vector.shape_cast %202 : vector<16xf32> to vector<16x1xf32>
    %cst_68 = arith.constant 3.200000e+01 : f32
    %204 = vector.broadcast %cst_68 : f32 to vector<16x1xf32>
    %205 = arith.divf %203, %204 : vector<16x1xf32>
    %206 = vector.broadcast %198 : vector<16x1xf32> to vector<16x32xf32>
    %207 = arith.subf %194, %206 : vector<16x32xf32>
    %cst_69 = arith.constant 9.99999997E-7 : f32
    %208 = vector.broadcast %cst_69 : f32 to vector<16x1xf32>
    %209 = arith.addf %205, %208 : vector<16x1xf32>
    %210 = math.rsqrt %209 : vector<16x1xf32>
    %211 = vector.broadcast %210 : vector<16x1xf32> to vector<16x32xf32>
    %212 = arith.mulf %207, %211 : vector<16x32xf32>
    %213 = arith.mulf %212, %12 : vector<16x32xf32>
    %214 = arith.addf %213, %15 : vector<16x32xf32>
    %cst_70 = arith.constant dense<0.000000e+00> : vector<16x32xf32>
    %215 = tpu.matmul %214, %16, %cst_70 {dimension_numbers = #tpu.dot_dimension_numbers<[1], [0], [0], [1], [0, 0, 1, 1], [], []>} : vector<16x32xf32>, vector<32x32xf32>, vector<16x32xf32> -> vector<16x32xf32>
    %216 = arith.addf %215, %6 : vector<16x32xf32>
    %cst_71 = arith.constant dense<0.000000e+00> : vector<16x32xf32>
    %217 = tpu.matmul %17, %216, %cst_71 {dimension_numbers = #tpu.dot_dimension_numbers<[1], [0], [0], [1], [0, 0, 1, 1], [], []>} : vector<16x16xf32>, vector<16x32xf32>, vector<16x32xf32> -> vector<16x32xf32>
    %218 = arith.addf %217, %24 : vector<16x32xf32>
    %cst_72 = arith.constant 0.000000e+00 : f32
    %219 = vector.broadcast %cst_72 : f32 to vector<16x32xf32>
    %220 = arith.maximumf %218, %219 : vector<16x32xf32>
    %221 = arith.addf %214, %220 : vector<16x32xf32>
    %cst_73 = arith.constant dense<0.000000e+00> : vector<16xf32>
    %222 = vector.multi_reduction <add>, %221, %cst_73 [1] : vector<16x32xf32> to vector<16xf32>
    %223 = vector.shape_cast %222 : vector<16xf32> to vector<16x1xf32>
    %cst_74 = arith.constant 3.200000e+01 : f32
    %224 = vector.broadcast %cst_74 : f32 to vector<16x1xf32>
    %225 = arith.divf %223, %224 : vector<16x1xf32>
    %226 = vector.broadcast %225 : vector<16x1xf32> to vector<16x32xf32>
    %227 = arith.subf %221, %226 : vector<16x32xf32>
    %228 = arith.mulf %227, %227 : vector<16x32xf32>
    %cst_75 = arith.constant dense<0.000000e+00> : vector<16xf32>
    %229 = vector.multi_reduction <add>, %228, %cst_75 [1] : vector<16x32xf32> to vector<16xf32>
    %230 = vector.shape_cast %229 : vector<16xf32> to vector<16x1xf32>
    %cst_76 = arith.constant 3.200000e+01 : f32
    %231 = vector.broadcast %cst_76 : f32 to vector<16x1xf32>
    %232 = arith.divf %230, %231 : vector<16x1xf32>
    %233 = vector.broadcast %225 : vector<16x1xf32> to vector<16x32xf32>
    %234 = arith.subf %221, %233 : vector<16x32xf32>
    %cst_77 = arith.constant 9.99999997E-7 : f32
    %235 = vector.broadcast %cst_77 : f32 to vector<16x1xf32>
    %236 = arith.addf %232, %235 : vector<16x1xf32>
    %237 = math.rsqrt %236 : vector<16x1xf32>
    %238 = vector.broadcast %237 : vector<16x1xf32> to vector<16x32xf32>
    %239 = arith.mulf %234, %238 : vector<16x32xf32>
    %240 = arith.mulf %239, %12 : vector<16x32xf32>
    %241 = arith.addf %240, %15 : vector<16x32xf32>
    %cst_78 = arith.constant dense<0.000000e+00> : vector<16x32xf32>
    %242 = tpu.matmul %241, %16, %cst_78 {dimension_numbers = #tpu.dot_dimension_numbers<[1], [0], [0], [1], [0, 0, 1, 1], [], []>} : vector<16x32xf32>, vector<32x32xf32>, vector<16x32xf32> -> vector<16x32xf32>
    %243 = arith.addf %242, %6 : vector<16x32xf32>
    %cst_79 = arith.constant dense<0.000000e+00> : vector<16x32xf32>
    %244 = tpu.matmul %17, %243, %cst_79 {dimension_numbers = #tpu.dot_dimension_numbers<[1], [0], [0], [1], [0, 0, 1, 1], [], []>} : vector<16x16xf32>, vector<16x32xf32>, vector<16x32xf32> -> vector<16x32xf32>
    %245 = arith.addf %244, %24 : vector<16x32xf32>
    %cst_80 = arith.constant 0.000000e+00 : f32
    %246 = vector.broadcast %cst_80 : f32 to vector<16x32xf32>
    %247 = arith.maximumf %245, %246 : vector<16x32xf32>
    %248 = arith.addf %241, %247 : vector<16x32xf32>
    %cst_81 = arith.constant dense<0.000000e+00> : vector<16xf32>
    %249 = vector.multi_reduction <add>, %248, %cst_81 [1] : vector<16x32xf32> to vector<16xf32>
    %250 = vector.shape_cast %249 : vector<16xf32> to vector<16x1xf32>
    %cst_82 = arith.constant 3.200000e+01 : f32
    %251 = vector.broadcast %cst_82 : f32 to vector<16x1xf32>
    %252 = arith.divf %250, %251 : vector<16x1xf32>
    %253 = vector.broadcast %252 : vector<16x1xf32> to vector<16x32xf32>
    %254 = arith.subf %248, %253 : vector<16x32xf32>
    %255 = arith.mulf %254, %254 : vector<16x32xf32>
    %cst_83 = arith.constant dense<0.000000e+00> : vector<16xf32>
    %256 = vector.multi_reduction <add>, %255, %cst_83 [1] : vector<16x32xf32> to vector<16xf32>
    %257 = vector.shape_cast %256 : vector<16xf32> to vector<16x1xf32>
    %cst_84 = arith.constant 3.200000e+01 : f32
    %258 = vector.broadcast %cst_84 : f32 to vector<16x1xf32>
    %259 = arith.divf %257, %258 : vector<16x1xf32>
    %260 = vector.broadcast %252 : vector<16x1xf32> to vector<16x32xf32>
    %261 = arith.subf %248, %260 : vector<16x32xf32>
    %cst_85 = arith.constant 9.99999997E-7 : f32
    %262 = vector.broadcast %cst_85 : f32 to vector<16x1xf32>
    %263 = arith.addf %259, %262 : vector<16x1xf32>
    %264 = math.rsqrt %263 : vector<16x1xf32>
    %265 = vector.broadcast %264 : vector<16x1xf32> to vector<16x32xf32>
    %266 = arith.mulf %261, %265 : vector<16x32xf32>
    %267 = arith.mulf %266, %12 : vector<16x32xf32>
    %268 = arith.addf %267, %15 : vector<16x32xf32>
    %c0_86 = arith.constant 0 : index
    %c0_87 = arith.constant 0 : index
    %269 = vector.load %arg8[%c0_86, %c0_87] : memref<16x32xf32, #tpu.memory_space<vmem>>, vector<16x32xf32>
    tpu.vector_store %arg8[%c0_86, %c0_87], %268 {strides = array<i32>} : memref<16x32xf32, #tpu.memory_space<vmem>>, vector<16x32xf32>,
    return
  }
  func.func @transform_0(%arg0: i32) -> (i32, i32) {
    %c0_i32 = arith.constant 0 : i32
    %c0_i32_0 = arith.constant 0 : i32
    %c0_i32_1 = arith.constant 0 : i32
    return %c0_i32, %c0_i32_0 : i32, i32
  }
  func.func @transform_1(%arg0: i32) -> (i32, i32) {
    %c0_i32 = arith.constant 0 : i32
    %c0_i32_0 = arith.constant 0 : i32
    %c0_i32_1 = arith.constant 0 : i32
    return %c0_i32, %c0_i32_0 : i32, i32
  }
  func.func @transform_2(%arg0: i32) -> (i32, i32) {
    %c0_i32 = arith.constant 0 : i32
    %c0_i32_0 = arith.constant 0 : i32
    %c0_i32_1 = arith.constant 0 : i32
    return %c0_i32, %c0_i32_0 : i32, i32
  }
  func.func @transform_3(%arg0: i32) -> (i32, i32) {
    %c0_i32 = arith.constant 0 : i32
    %c0_i32_0 = arith.constant 0 : i32
    %c0_i32_1 = arith.constant 0 : i32
    return %c0_i32, %c0_i32_0 : i32, i32
  }
  func.func @transform_4(%arg0: i32) -> (i32, i32) {
    %c0_i32 = arith.constant 0 : i32
    %c0_i32_0 = arith.constant 0 : i32
    %c0_i32_1 = arith.constant 0 : i32
    return %c0_i32, %c0_i32_0 : i32, i32
  }
  func.func @transform_5(%arg0: i32) -> (i32, i32) {
    %c0_i32 = arith.constant 0 : i32
    %c0_i32_0 = arith.constant 0 : i32
    %c0_i32_1 = arith.constant 0 : i32
    return %c0_i32, %c0_i32_0 : i32, i32
  }
  func.func @transform_6(%arg0: i32) -> (i32, i32) {
    %c0_i32 = arith.constant 0 : i32
    %c0_i32_0 = arith.constant 0 : i32
    %c0_i32_1 = arith.constant 0 : i32
    return %c0_i32, %c0_i32_0 : i32, i32
  }
  func.func @transform_7(%arg0: i32) -> (i32, i32) {
    %c0_i32 = arith.constant 0 : i32
    %c0_i32_0 = arith.constant 0 : i32
    %c0_i32_1 = arith.constant 0 : i32
    return %c0_i32, %c0_i32_0 : i32, i32
  }
}

</mosaic_0001>

<bundles_post_ra>
// kernel: tpu_custom_call.1
= control target key start
LH: loop header
LB: loop body
LE: loop exit
PB: predicated region body
PF: predicated region fallthrough
CT: control target
= control target key end

     0   :  { %s3001_s0 = inlined_call_operand.vmem [shape: f32[16,320], index: 0, kind: input, shape index: {}]   ;;  %s3002_s1 = inlined_call_operand.vmem [shape: f32[320,32], index: 1, kind: input, shape index: {}]   ;;  %s3003_s2 = inlined_call_operand.vmem [shape: f32[16,16], index: 2, kind: input, shape index: {}]   ;;  %s3004_s3 = inlined_call_operand.vmem [shape: f32[16,32], index: 3, kind: input, shape index: {}]   ;;  %s3005_s4 = inlined_call_operand.vmem [shape: f32[32,32], index: 4, kind: input, shape index: {}]   ;;  %s3006_s5 = inlined_call_operand.vmem [shape: f32[32,32], index: 5, kind: input, shape index: {}]   ;;  %s3007_s6 = inlined_call_operand.vmem [shape: f32[8,32], index: 6, kind: input, shape index: {}]   ;;  %s3008_s7 = inlined_call_operand.hbm [shape: f32[16,32], index: 7, kind: output, shape index: {}]  }
   0x1   :  { %v91_v0 = vld [vmem:[%s3002_s1 + $0xf8] sm:$0xff]  ;;  %v90_v2 = vld [vmem:[%s3002_s1 + $0xf0] sm:$0xff]  ;;  %v89_v4 = vld [vmem:[%s3002_s1 + $0xe8] sm:$0xff] }
   0x2   :  { %v75_v1 = vld [vmem:[%s3002_s1 + $0x78] sm:$0xff]  ;;  %2121 = vmatprep.subr.mxu0 %v91_v0  ;;  %v74_v3 = vld [vmem:[%s3002_s1 + $0x70] sm:$0xff]  ;;  %v73_v5 = vld [vmem:[%s3002_s1 + $0x68] sm:$0xff] }
   0x3   :  { %2122 = vmatpush3.msra.mxu0 %v75_v1  ;;  %v88_v6 = vld [vmem:[%s3002_s1 + $0xe0] sm:$0xff]  ;;  %v87_v8 = vld [vmem:[%s3002_s1 + $0xd8] sm:$0xff]  ;;  %v86_v11 = vld [vmem:[%s3002_s1 + $0xd0] sm:$0xff] }
   0x4   :  { %2123 = vmatprep.subr.mxu0 %v90_v2  ;;  %v72_v7 = vld [vmem:[%s3002_s1 + $0x60] sm:$0xff]  ;;  %v71_v9 = vld [vmem:[%s3002_s1 + $0x58] sm:$0xff]  ;;  %v98_v12 = vld [vmem:[%s3002_s1 + $0x130] sm:$0xff] }
   0x5   :  { %2124 = vmatpush3.msra.mxu0 %v74_v3  ;;  %v99_v10 = vld [vmem:[%s3002_s1 + $0x138] sm:$0xff]  ;;  %v70_v13 = vld [vmem:[%s3002_s1 + $0x50] sm:$0xff]  ;;  %v97_v14 = vld [vmem:[%s3002_s1 + $0x128] sm:$0xff] }
   0x6   :  { %2125 = vmatprep.subr.mxu0 %v89_v4  ;;  %2265 = vmatprep.subr.mxu1 %v99_v10  ;;  %v85_v15 = vld [vmem:[%s3002_s1 + $0xc8] sm:$0xff]  ;;  %v96_v17 = vld [vmem:[%s3002_s1 + $0x120] sm:$0xff]  ;;  %v95_v20 = vld [vmem:[%s3002_s1 + $0x118] sm:$0xff] }
   0x7   :  { %2126 = vmatpush3.msra.mxu0 %v73_v5  ;;  %2266 = vmatpush3.msra.mxu1 %v99_v10  ;;  %v69_v16 = vld [vmem:[%s3002_s1 + $0x48] sm:$0xff]  ;;  %v84_v18 = vld [vmem:[%s3002_s1 + $0xc0] sm:$0xff]  ;;  %v83_v21 = vld [vmem:[%s3002_s1 + $0xb8] sm:$0xff] }
   0x8   :  { %2127 = vmatprep.subr.mxu0 %v88_v6  ;;  %2267 = vmatprep.subr.mxu1 %v98_v12  ;;  %v68_v19 = vld [vmem:[%s3002_s1 + $0x40] sm:$0xff]  ;;  %v67_v22 = vld [vmem:[%s3002_s1 + $0x38] sm:$0xff]  ;;  %v94_v23 = vld [vmem:[%s3002_s1 + $0x110] sm:$0xff] }
   0x9   :  { %2128 = vmatpush3.msra.mxu0 %v72_v7  ;;  %2268 = vmatpush3.msra.mxu1 %v98_v12 }
   0xa   :  { %2129 = vmatprep.subr.mxu0 %v87_v8  ;;  %2269 = vmatprep.subr.mxu1 %v97_v14 }
   0xb   :  { %2130 = vmatpush3.msra.mxu0 %v71_v9  ;;  %2270 = vmatpush3.msra.mxu1 %v97_v14 }
   0xc   :  { %2131 = vmatprep.subr.mxu0 %v86_v11  ;;  %2271 = vmatprep.subr.mxu1 %v96_v17 }
   0xd   :  { %2132 = vmatpush3.msra.mxu0 %v70_v13  ;;  %2272 = vmatpush3.msra.mxu1 %v96_v17 }
   0xe   :  { %2133 = vmatprep.subr.mxu0 %v85_v15 }
   0xf   :  { %2134 = vmatpush3.msra.mxu0 %v69_v16 }
  0x10   :  { %2135 = vmatprep.subr.mxu0 %v84_v18 }
  0x11   :  { %12 = vsyncpa [#allocation3], 0  ;;  %2136 = vmatpush3.msra.mxu0 %v68_v19  ;;  %v82_v24 = vld [vmem:[%s3002_s1 + $0xb0] sm:$0xff]  ;;  %2273 = vmatprep.subr.mxu1 %v95_v20  ;;  %v55_v25 = vld [vmem:[%s3001_s0 + $0x8] sm:$0xff]  ;;  %vm100_vm0 = vcmask 523264   ;;  %v28_v46 = vlaneseq  ;;  %vm261_vm1 = vcmask 261120  }
  0x12   :  { %2137 = vmatprep.subr.mxu0 %v83_v21  ;;  %v66_v26 = vld [vmem:[%s3002_s1 + $0x30] sm:$0xff]  ;;  %2274 = vmatpush3.msra.mxu1 %v95_v20  ;;  %v81_v27 = vld [vmem:[%s3002_s1 + $0xa8] sm:$0xff]  ;;  %v80_v30 = vld [vmem:[%s3002_s1 + $0xa0] sm:$0xff]  ;;  %vm426_vm2 = vcmask 130048  }
  0x13   :  { %2138 = vmatpush3.msra.mxu0 %v67_v22  ;;  %2275 = vmatprep.subr.mxu1 %v94_v23  ;;  %v93_v28 = vld [vmem:[%s3002_s1 + $0x108] sm:$0xff]  ;;  %v92_v31 = vld [vmem:[%s3002_s1 + $0x100] sm:$0xff]  ;;  %v79_v33 = vld [vmem:[%s3002_s1 + $0x98] sm:$0xff]  ;;  %v29_v47 = vshrl.u32 %v28_v46, 7 }
  0x14   :  { %2139 = vmatprep.subr.mxu0 %v82_v24  ;;  %v65_v29 = vld [vmem:[%s3002_s1 + $0x28] sm:$0xff]  ;;  %171 = vmatprep.mubr.f32.mxu0 %v55_v25  ;;  %v64_v32 = vld [vmem:[%s3002_s1 + $0x20] sm:$0xff]  ;;  %v56_v34 = vld [vmem:[%s3001_s0 + $0x10] sm:$0xff] }
  0x15   :  { %2140 = vmatpush3.msra.mxu0 %v66_v26  ;;  %2276 = vmatpush3.msra.mxu1 %v94_v23  ;;  %v63_v35 = vld [vmem:[%s3002_s1 + $0x18] sm:$0xff]  ;;  %v59_v36 = vld [vmem:[%s3001_s0 + $0x28] sm:$0xff]  ;;  %v78_v37 = vld [vmem:[%s3002_s1 + $0x90] sm:$0xff]  ;;  %v34_v49 = vsub.s32 1, %v29_v47  ;;  %v42_v50 = vsub.s32 3, %v29_v47  ;;  %v46_v51 = vsub.s32 4, %v29_v47 }
  0x16   :  { %2141 = vmatprep.subr.mxu0 %v81_v27  ;;  %2277 = vmatprep.subr.mxu1 %v93_v28  ;;  %v62_v38 = vld [vmem:[%s3002_s1 + $0x10] sm:$0xff]  ;;  %v77_v39 = vld [vmem:[%s3002_s1 + $0x88] sm:$0xff]  ;;  %v76_v41 = vld [vmem:[%s3002_s1 + $0x80] sm:$0xff]  ;;  %v38_v63 = vsub.s32 2, %v29_v47  ;;  %v30_v1 = vsub.s32 0, %v29_v47 }
  0x17   :  { %2142 = vmatpush3.msra.mxu0 %v65_v29  ;;  %2278 = vmatpush3.msra.mxu1 %v93_v28  ;;  %v61_v40 = vld [vmem:[%s3002_s1 + $0x8] sm:$0xff]  ;;  %v60_v42 = vld [vmem:[%s3002_s1] sm:$0xff]  ;;  %v57_v45 = vld [vmem:[%s3001_s0 + $0x18] sm:$0xff] }
  0x18   :  { %2143 = vmatprep.subr.mxu0 %v80_v30  ;;  %2279 = vmatprep.subr.mxu1 %v92_v31  ;;  %v54_v43 = vld [vmem:[%s3001_s0] sm:$0xff]  ;;  %v260_v48 = vld [vmem:[%s3006_s5 + $0x18] sm:$0xff]  ;;  %v259_v53 = vld [vmem:[%s3006_s5 + $0x10] sm:$0xff] }
  0x19   :  { %2144 = vmatpush3.msra.mxu0 %v64_v32  ;;  %2280 = vmatpush3.msra.mxu1 %v92_v31  ;;  %v58_v44 = vld [vmem:[%s3001_s0 + $0x20] sm:$0xff]  ;;  %v258_v57 = vld [vmem:[%s3006_s5 + $0x8] sm:$0xff]  ;;  %v2723_v59 = vld [vmem:[%s3005_s4 + $0x18] sm:$0xff] }
  0x1a   :  { %2145 = vmatprep.subr.mxu0 %v79_v33  ;;  %2281 = vmatprep.mubr.msk.f32.mxu1 %vm100_vm0, %v56_v34  ;;  %v27_v52 = vld [vmem:[%s3007_s6] sm:$0xff]  ;;  %v2731_v60 = vld [vmem:[%s3005_s4 + $0x10] sm:$0xff]  ;;  %v2737_v61 = vld [vmem:[%s3005_s4 + $0x8] sm:$0xff] }
  0x1b   :  { %2146 = vmatpush3.msra.mxu0 %v63_v35  ;;  %2282 = vmatmul.mubr.msk.f32.vlgmr.msra.gmra.mxu1 %vm100_vm0, %v59_v36  ;;  %v2708_v54 = vrot.slane %v27_v52, %v34_v49  ;;  %v2710_v55 = vrot.slane %v27_v52, %v42_v50  ;;  %v2712_v56 = vrot.slane %v27_v52, %v46_v51  ;;  %v257_v58 = vld [vmem:[%s3006_s5] sm:$0xff]  ;;  %v344_v16 = vld [vmem:[%s3004_s3 + $0x8] sm:$0xff] }
  0x1c   :  { %2147 = vmatprep.subr.mxu0 %v78_v37  ;;  %2284 = vmatprep.subr.mxu1 %v260_v48  ;;  %v2744_v62 = vld [vmem:[%s3005_s4] sm:$0xff]  ;;  %v39_v0 = vrot.slane %v27_v52, %v38_v63  ;;  %v31_v4 = vrot.slane %v27_v52, %v30_v1  ;;  %v2783_v26 = vld [vmem:[%s3003_s2 + $0x8] sm:$0xff] }
  0x1d   :  { %2148 = vmatpush3.msra.mxu0 %v62_v38  ;;  %2285 = vmatpush3.msra.mxu1 %v260_v48  ;;  %v343_v15 = vld [vmem:[%s3004_s3] sm:$0xff] }
  0x1e   :  { %2149 = vmatprep.subr.mxu0 %v77_v39  ;;  %2286 = vmatprep.subr.mxu1 %v259_v53  ;;  %v2770_v17 = vld [vmem:[%s3003_s2] sm:$0xff]  ;;  %s2518_s2 = smov [#allocation2]  }
  0x1f   :  { %2150 = vmatpush3.msra.mxu0 %v61_v40  ;;  %2287 = vmatpush3.msra.mxu1 %v259_v53  ;;  %s2070_s21 = sshll.u32 %s2518_s2, 4  ;;  %s2071_s21 = int_to_ptr.vmem [resolvable:$true] %s2070_s21 }
  0x20   :  { %2151 = vmatprep.subr.mxu0 %v76_v41  ;;  %2288 = vmatprep.subr.mxu1 %v258_v57  ;;  %s2496_s22 = scalar_lea.vmem %s2071_s21, 256  ;;  %p2501_p1 = scmp.lt.s32.totalorder %s2071_s21, %s2071_s21 }
  0x21   :  { %2152 = vmatpush3.msra.mxu0 %v60_v42  ;;  %2289 = vmatpush3.msra.mxu1 %v258_v57  ;;  %p2497_p0 = scmp.ne.s32.totalorder %s2071_s21, %s2496_s22  ;;  %p2502_p2 = scmp.lt.s32.totalorder %s2496_s22, %s2496_s22 }
  0x22   :  { %172 = vmatmul.mubr.f32.vlgmr.msra.gmra.mxu0 %v54_v43  ;;  %2290 = vmatprep.subr.mxu1 %v257_v58 }
  0x23   :  { %176 = vmatprep.mubr.f32.mxu0 %v58_v44  ;;  %2291 = vmatpush3.msra.mxu1 %v257_v58  ;;  %p2503_p3 = por %p2502_p2, %p2501_p1 }
  0x24   :  { %2295 = vmatprep.subr.mxu1 %v2723_v59  ;;  %2313 = vmatprep.subr.mxu0 %v2723_v59 }
  0x25   :  { %2314 = vmatpush3.msra.mxu0 %v2723_v59  ;;  %p2504_p4 = pnand %p2503_p3, %p2497_p0 }
  0x26   :  { %177 = vmatmul.mubr.f32.gmra.mxu0 %v57_v45  ;;  %2315 = vmatprep.subr.mxu0 %v2731_v60 }
  0x27   :  { %2316 = vmatpush3.msra.mxu0 %v2731_v60 }
  0x28   :  { %2317 = vmatprep.subr.mxu0 %v2737_v61 }
  0x29   :  { %2318 = vmatpush3.msra.mxu0 %v2737_v61 }
  0x2a   :  { %2319 = vmatprep.subr.mxu0 %v2744_v62 }
  0x2b   :  { %2320 = vmatpush3.msra.mxu0 %v2744_v62 }
  0x2c   :  { %2331 = vmatprep.subr.mxu0 %v2723_v59 }
  0xdb   :  { %v2283_v3 = vpop.f32.mrf.mxu1 }
  0xdd   :  { %v248_v8 = vpop.f32.mrf.mxu1 }
  0xe2   :  { %v2153_v2 = vpop.f32.mrf.mxu0 }
  0xe4   :  { %v2154_v5 = vpop.f32.mrf.mxu0 }
  0xe5   :  { %v2155_v6 = vadd.f32 %v2154_v5, %v2153_v2 }
  0xe6   :  { %v2156_v7 = vpop.f32.mrf.mxu0 }
  0xe7   :  { %v174_v9 = vadd.f32 %v2155_v6, %v31_v4 }
  0xe8   :  { %v2157_v10 = vpop.f32.mrf.mxu0 }
  0xe9   :  { %v2158_v11 = vadd.f32 %v2157_v10, %v2156_v7  ;;  %v249_v12 = vadd.f32 %v248_v8, %v174_v9 }
  0xeb   :  { %v179_v13 = vadd.f32 %v2158_v11, %v31_v4  ;;  %2292 = vmatprep.mubr.msk.f32.mxu1 %vm261_vm1, %v249_v12 }
  0xed   :  { %v254_v14 = vadd.f32 %v2283_v3, %v179_v13 }
  0xef   :  { %2293 = vmatmul.mubr.msk.f32.vlgmr.msra.gmra.mxu1 %vm261_vm1, %v254_v14 }
  0xf0   :  { %2296 = vmatpush3.msra.mxu1 %v2723_v59  ;;  %2303 = vmatprep.mubr.msk.f32.mxu1 %vm261_vm1, %v343_v15 }
  0xf1   :  { %2297 = vmatprep.subr.mxu1 %v2731_v60 }
  0xf2   :  { %2298 = vmatpush3.msra.mxu1 %v2731_v60 }
  0xf3   :  { %2299 = vmatprep.subr.mxu1 %v2737_v61 }
  0xf4   :  { %2300 = vmatpush3.msra.mxu1 %v2737_v61 }
  0xf5   :  { %2301 = vmatprep.subr.mxu1 %v2744_v62 }
  0xf6   :  { %2302 = vmatpush3.msra.mxu1 %v2744_v62 }
  0xf7   :  { %2304 = vmatmul.mubr.msk.f32.vlgmr.msra.gmra.mxu1 %vm261_vm1, %v344_v16 }
  0xf8   :  { %2310 = vmatprep.mubr.msk.f32.mxu1 %vm426_vm2, %v2770_v17 }
 0x1af   :  { %v2294_v18 = vpop.f32.mrf.mxu1 }
 0x1b0   :  { %v2774_v19 = vadd.f32 %v2294_v18, %v39_v0 }
 0x1b1   :  { %v334_v20 = vpop.f32.mrf.mxu1 }
 0x1b2   :  { %v2776_v21 = vadd.f32 %v334_v20, %v39_v0 }
 0x1b7   :  { %v2305_v22 = vpop.f32.mrf.mxu1 }
 0x1b8   :  { %v423_v23 = vadd.f32 %v2305_v22, %v2708_v54 }
 0x1b9   :  { %v417_v24 = vpop.f32.mrf.mxu1 }
 0x1ba   :  { %v418_v25 = vadd.f32 %v417_v24, %v2708_v54  ;;  %2306 = vmatprep.subr.mxu1 %v423_v23 }
 0x1bb   :  { %2307 = vmatpush3.msra.mxu1 %v423_v23 }
 0x1bc   :  { %2308 = vmatprep.subr.mxu1 %v418_v25 }
 0x1bd   :  { %2309 = vmatpush3.msra.mxu1 %v418_v25 }
 0x1be   :  { %2311 = vmatmul.mubr.msk.f32.vlgmr.msra.gmra.mxu1 %vm426_vm2, %v2783_v26 }
 0x1bf   :  { %2328 = vmatprep.mubr.msk.f32.mxu1 %vm426_vm2, %v2770_v17 }
 0x27e   :  { %v2312_v27 = vpop.f32.mrf.mxu1 }
 0x27f   :  { %v505_v28 = vadd.f32 %v2312_v27, %v2774_v19 }
 0x280   :  { %v499_v29 = vpop.f32.mrf.mxu1 }
 0x281   :  { %v500_v30 = vadd.f32 %v499_v29, %v2776_v21  ;;  %v509_v31 = vmax.f32 %v505_v28, 0.0 }
 0x283   :  { %v508_v32 = vmax.f32 %v500_v30, 0.0  ;;  %v511_v35 = vadd.f32 %v509_v31, %v344_v16 }
 0x285   :  { %v510_v33 = vadd.f32 %v508_v32, %v343_v15  ;;  %v515_v36 = vsel %vm261_vm1, %v511_v35, 0.0 }
 0x287   :  { %v512_v34 = vsel %vm261_vm1, %v510_v33, 0.0 }
 0x288   :  { %513 = vadd.xlane.f32.xlu0 %v512_v34 }
 0x28c   :  { %516 = vadd.xlane.f32.xlu0 %v515_v36 }
 0x311   :  { %v514_v37 = vpop.xlane.xlu0 %513 }
 0x312   :  { %v519_v38 = vmul.f32 0.03125, %v514_v37 }
 0x314   :  { %v521_v39 = vsub.f32 %v510_v33, %v519_v38 }
 0x315   :  { %v517_v40 = vpop.xlane.xlu0 %516 }
 0x316   :  { %v520_v41 = vmul.f32 0.03125, %v517_v40  ;;  %v523_v42 = vmul.f32 %v521_v39, %v521_v39 }
 0x318   :  { %v522_v43 = vsub.f32 %v511_v35, %v520_v41  ;;  %v525_v44 = vsel %vm261_vm1, %v523_v42, 0.0 }
 0x319   :  { %526 = vadd.xlane.f32.xlu1 %v525_v44 }
 0x31a   :  { %v524_v45 = vmul.f32 %v522_v43, %v522_v43 }
 0x31c   :  { %v528_v46 = vsel %vm261_vm1, %v524_v45, 0.0 }
 0x31d   :  { %529 = vadd.xlane.f32.xlu1 %v528_v46 }
 0x3a2   :  { %v527_v47 = vpop.xlane.xlu1 %526 }
 0x3a3   :  { %v531_v48 = vmul.f32 0.03125, %v527_v47 }
 0x3a5   :  { %v533_v49 = vadd.f32 1e-06, %v531_v48 }
 0x3a6   :  { %v530_v50 = vpop.xlane.xlu1 %529 }
 0x3a7   :  { %2460 = vrsqrt.f32 %v533_v49  ;;  %v532_v51 = vmul.f32 0.03125, %v530_v50 }
 0x3a9   :  { %v534_v52 = vadd.f32 1e-06, %v532_v51 }
 0x3ab   :  { %2462 = vrsqrt.f32 %v534_v52 }
 0x3b4   :  { %v2461_v53 = vpop.eup %2460 }
 0x3b5   :  { %v537_v57 = vmul.f32 %v2461_v53, %v521_v39 }
 0x3b7   :  { %v539_v58 = vmul.f32 %v537_v57, %v2710_v55 }
 0x3b8   :  { %v2463_v63 = vpop.eup %2462 }
 0x3b9   :  { %v538_v0 = vmul.f32 %v2463_v63, %v522_v43  ;;  %v541_v1 = vadd.f32 %v539_v58, %v2712_v56 }
 0x3bb   :  { %v540_v2 = vmul.f32 %v538_v0, %v2710_v55  ;;  %2321 = vmatprep.mubr.msk.f32.mxu0 %vm261_vm1, %v541_v1 }
 0x3bd   :  { %v542_v3 = vadd.f32 %v540_v2, %v2712_v56 }
 0x3bf   :  { %2322 = vmatmul.mubr.msk.f32.vlgmr.msra.gmra.mxu0 %vm261_vm1, %v542_v3 }
 0x3c0   :  { %2332 = vmatpush3.msra.mxu0 %v2723_v59 }
 0x3c1   :  { %2333 = vmatprep.subr.mxu0 %v2731_v60 }
 0x3c2   :  { %2334 = vmatpush3.msra.mxu0 %v2731_v60 }
 0x3c3   :  { %2335 = vmatprep.subr.mxu0 %v2737_v61 }
 0x3c4   :  { %2336 = vmatpush3.msra.mxu0 %v2737_v61 }
 0x3c5   :  { %2337 = vmatprep.subr.mxu0 %v2744_v62 }
 0x3c6   :  { %2338 = vmatpush3.msra.mxu0 %v2744_v62 }
 0x47f   :  { %v2323_v4 = vpop.f32.mrf.mxu0 }
 0x480   :  { %v621_v5 = vadd.f32 %v2323_v4, %v2708_v54 }
 0x481   :  { %v615_v6 = vpop.f32.mrf.mxu0 }
 0x482   :  { %v616_v7 = vadd.f32 %v615_v6, %v2708_v54  ;;  %2324 = vmatprep.subr.mxu1 %v621_v5 }
 0x483   :  { %2325 = vmatpush3.msra.mxu1 %v621_v5 }
 0x484   :  { %2326 = vmatprep.subr.mxu1 %v616_v7 }
 0x485   :  { %2327 = vmatpush3.msra.mxu1 %v616_v7 }
 0x486   :  { %2329 = vmatmul.mubr.msk.f32.vlgmr.msra.gmra.mxu1 %vm426_vm2, %v2783_v26 }
 0x487   :  { %2346 = vmatprep.mubr.msk.f32.mxu1 %vm426_vm2, %v2770_v17 }
 0x546   :  { %v2330_v8 = vpop.f32.mrf.mxu1 }
 0x547   :  { %v696_v9 = vadd.f32 %v2330_v8, %v2774_v19 }
 0x548   :  { %v690_v10 = vpop.f32.mrf.mxu1 }
 0x549   :  { %v700_v11 = vmax.f32 %v696_v9, 0.0  ;;  %v691_v12 = vadd.f32 %v690_v10, %v2776_v21 }
 0x54b   :  { %v699_v13 = vmax.f32 %v691_v12, 0.0  ;;  %v702_v14 = vadd.f32 %v700_v11, %v542_v3 }
 0x54d   :  { %v706_v15 = vsel %vm261_vm1, %v702_v14, 0.0  ;;  %v701_v16 = vadd.f32 %v699_v13, %v541_v1 }
 0x54e   :  { %707 = vadd.xlane.f32.xlu1 %v706_v15 }
 0x54f   :  { %v703_v18 = vsel %vm261_vm1, %v701_v16, 0.0 }
 0x550   :  { %704 = vadd.xlane.f32.xlu0 %v703_v18 }
 0x5d7   :  { %v708_v20 = vpop.xlane.xlu1 %707 }
 0x5d8   :  { %v710_v22 = vmul.f32 0.03125, %v708_v20 }
 0x5d9   :  { %v705_v23 = vpop.xlane.xlu0 %704 }
 0x5da   :  { %v712_v24 = vsub.f32 %v702_v14, %v710_v22  ;;  %v709_v25 = vmul.f32 0.03125, %v705_v23 }
 0x5dc   :  { %v711_v27 = vsub.f32 %v701_v16, %v709_v25  ;;  %v714_v28 = vmul.f32 %v712_v24, %v712_v24 }
 0x5de   :  { %v718_v29 = vsel %vm261_vm1, %v714_v28, 0.0  ;;  %v713_v30 = vmul.f32 %v711_v27, %v711_v27 }
 0x5df   :  { %719 = vadd.xlane.f32.xlu1 %v718_v29 }
 0x5e0   :  { %v715_v31 = vsel %vm261_vm1, %v713_v30, 0.0 }
 0x5e1   :  { %716 = vadd.xlane.f32.xlu0 %v715_v31 }
 0x668   :  { %v720_v32 = vpop.xlane.xlu1 %719 }
 0x669   :  { %v722_v33 = vmul.f32 0.03125, %v720_v32 }
 0x66a   :  { %v717_v34 = vpop.xlane.xlu0 %716 }
 0x66b   :  { %v724_v35 = vadd.f32 1e-06, %v722_v33  ;;  %v721_v36 = vmul.f32 0.03125, %v717_v34 }
 0x66d   :  { %2464 = vrsqrt.f32 %v724_v35  ;;  %v723_v37 = vadd.f32 1e-06, %v721_v36 }
 0x66f   :  { %2466 = vrsqrt.f32 %v723_v37 }
 0x67a   :  { %v2465_v38 = vpop.eup %2464 }
 0x67b   :  { %v728_v39 = vmul.f32 %v2465_v38, %v712_v24 }
 0x67c   :  { %v2467_v40 = vpop.eup %2466 }
 0x67d   :  { %v727_v41 = vmul.f32 %v2467_v40, %v711_v27  ;;  %v730_v42 = vmul.f32 %v728_v39, %v2710_v55 }
 0x67f   :  { %v729_v43 = vmul.f32 %v727_v41, %v2710_v55  ;;  %v732_v45 = vadd.f32 %v730_v42, %v2712_v56 }
 0x681   :  { %v731_v44 = vadd.f32 %v729_v43, %v2712_v56 }
 0x683   :  { %2339 = vmatprep.mubr.msk.f32.mxu0 %vm261_vm1, %v731_v44 }
 0x684   :  { %2340 = vmatmul.mubr.msk.f32.vlgmr.msra.gmra.mxu0 %vm261_vm1, %v732_v45 }
 0x685   :  { %2364 = vmatprep.mubr.msk.f32.mxu0 %vm426_vm2, %v2770_v17 }
 0x744   :  { %v2341_v46 = vpop.f32.mrf.mxu0 }
 0x745   :  { %v811_v47 = vadd.f32 %v2341_v46, %v2708_v54 }
 0x746   :  { %v805_v48 = vpop.f32.mrf.mxu0 }
 0x747   :  { %v806_v49 = vadd.f32 %v805_v48, %v2708_v54  ;;  %2342 = vmatprep.subr.mxu1 %v811_v47 }
 0x748   :  { %2343 = vmatpush3.msra.mxu1 %v811_v47 }
 0x749   :  { %2344 = vmatprep.subr.mxu1 %v806_v49 }
 0x74a   :  { %2345 = vmatpush3.msra.mxu1 %v806_v49 }
 0x74b   :  { %2347 = vmatmul.mubr.msk.f32.vlgmr.msra.gmra.mxu1 %vm426_vm2, %v2783_v26  ;;  %2349 = vmatprep.subr.mxu1 %v2723_v59 }
 0x74c   :  { %2350 = vmatpush3.msra.mxu1 %v2723_v59 }
 0x74d   :  { %2351 = vmatprep.subr.mxu1 %v2731_v60 }
 0x74e   :  { %2352 = vmatpush3.msra.mxu1 %v2731_v60 }
 0x74f   :  { %2353 = vmatprep.subr.mxu1 %v2737_v61 }
 0x750   :  { %2354 = vmatpush3.msra.mxu1 %v2737_v61 }
 0x751   :  { %2355 = vmatprep.subr.mxu1 %v2744_v62 }
 0x752   :  { %2356 = vmatpush3.msra.mxu1 %v2744_v62 }
 0x80b   :  { %v2348_v50 = vpop.f32.mrf.mxu1 }
 0x80c   :  { %v886_v51 = vadd.f32 %v2348_v50, %v2774_v19 }
 0x80d   :  { %v880_v52 = vpop.f32.mrf.mxu1 }
 0x80e   :  { %v890_v53 = vmax.f32 %v886_v51, 0.0  ;;  %v881_v57 = vadd.f32 %v880_v52, %v2776_v21 }
 0x810   :  { %v889_v58 = vmax.f32 %v881_v57, 0.0  ;;  %v892_v63 = vadd.f32 %v890_v53, %v732_v45 }
 0x812   :  { %v896_v0 = vsel %vm261_vm1, %v892_v63, 0.0  ;;  %v891_v1 = vadd.f32 %v889_v58, %v731_v44 }
 0x813   :  { %897 = vadd.xlane.f32.xlu1 %v896_v0 }
 0x814   :  { %v893_v2 = vsel %vm261_vm1, %v891_v1, 0.0 }
 0x815   :  { %894 = vadd.xlane.f32.xlu0 %v893_v2 }
 0x89c   :  { %v898_v3 = vpop.xlane.xlu1 %897 }
 0x89d   :  { %v900_v4 = vmul.f32 0.03125, %v898_v3 }
 0x89e   :  { %v895_v5 = vpop.xlane.xlu0 %894 }
 0x89f   :  { %v902_v6 = vsub.f32 %v892_v63, %v900_v4  ;;  %v899_v7 = vmul.f32 0.03125, %v895_v5 }
 0x8a1   :  { %v901_v8 = vsub.f32 %v891_v1, %v899_v7  ;;  %v904_v9 = vmul.f32 %v902_v6, %v902_v6 }
 0x8a3   :  { %v908_v10 = vsel %vm261_vm1, %v904_v9, 0.0  ;;  %v903_v11 = vmul.f32 %v901_v8, %v901_v8 }
 0x8a4   :  { %909 = vadd.xlane.f32.xlu1 %v908_v10 }
 0x8a5   :  { %v905_v12 = vsel %vm261_vm1, %v903_v11, 0.0 }
 0x8a6   :  { %906 = vadd.xlane.f32.xlu0 %v905_v12 }
 0x92d   :  { %v910_v13 = vpop.xlane.xlu1 %909 }
 0x92e   :  { %v912_v14 = vmul.f32 0.03125, %v910_v13 }
 0x92f   :  { %v907_v15 = vpop.xlane.xlu0 %906 }
 0x930   :  { %v914_v16 = vadd.f32 1e-06, %v912_v14  ;;  %v911_v18 = vmul.f32 0.03125, %v907_v15 }
 0x932   :  { %2468 = vrsqrt.f32 %v914_v16  ;;  %v913_v20 = vadd.f32 1e-06, %v911_v18 }
 0x934   :  { %2470 = vrsqrt.f32 %v913_v20 }
 0x93f   :  { %v2469_v22 = vpop.eup %2468 }
 0x940   :  { %v918_v23 = vmul.f32 %v2469_v22, %v902_v6 }
 0x941   :  { %v2471_v24 = vpop.eup %2470 }
 0x942   :  { %v917_v25 = vmul.f32 %v2471_v24, %v901_v8  ;;  %v920_v27 = vmul.f32 %v918_v23, %v2710_v55 }
 0x944   :  { %v919_v28 = vmul.f32 %v917_v25, %v2710_v55  ;;  %v922_v30 = vadd.f32 %v920_v27, %v2712_v56 }
 0x946   :  { %v921_v29 = vadd.f32 %v919_v28, %v2712_v56 }
 0x948   :  { %2357 = vmatprep.mubr.msk.f32.mxu1 %vm261_vm1, %v921_v29 }
 0x949   :  { %2358 = vmatmul.mubr.msk.f32.vlgmr.msra.gmra.mxu1 %vm261_vm1, %v922_v30 }
 0x94a   :  { %2382 = vmatprep.mubr.msk.f32.mxu1 %vm426_vm2, %v2770_v17 }
 0xa09   :  { %v2359_v31 = vpop.f32.mrf.mxu1 }
 0xa0a   :  { %v1001_v32 = vadd.f32 %v2359_v31, %v2708_v54 }
 0xa0b   :  { %v995_v33 = vpop.f32.mrf.mxu1 }
 0xa0c   :  { %v996_v34 = vadd.f32 %v995_v33, %v2708_v54  ;;  %2360 = vmatprep.subr.mxu0 %v1001_v32 }
 0xa0d   :  { %2361 = vmatpush3.msra.mxu0 %v1001_v32 }
 0xa0e   :  { %2362 = vmatprep.subr.mxu0 %v996_v34 }
 0xa0f   :  { %2363 = vmatpush3.msra.mxu0 %v996_v34 }
 0xa10   :  { %2365 = vmatmul.mubr.msk.f32.vlgmr.msra.gmra.mxu0 %vm426_vm2, %v2783_v26  ;;  %2367 = vmatprep.subr.mxu0 %v2723_v59 }
 0xa11   :  { %2368 = vmatpush3.msra.mxu0 %v2723_v59 }
 0xa12   :  { %2369 = vmatprep.subr.mxu0 %v2731_v60 }
 0xa13   :  { %2370 = vmatpush3.msra.mxu0 %v2731_v60 }
 0xa14   :  { %2371 = vmatprep.subr.mxu0 %v2737_v61 }
 0xa15   :  { %2372 = vmatpush3.msra.mxu0 %v2737_v61 }
 0xa16   :  { %2373 = vmatprep.subr.mxu0 %v2744_v62 }
 0xa17   :  { %2374 = vmatpush3.msra.mxu0 %v2744_v62 }
 0xad0   :  { %v2366_v35 = vpop.f32.mrf.mxu0 }
 0xad1   :  { %v1076_v36 = vadd.f32 %v2366_v35, %v2774_v19 }
 0xad2   :  { %v1070_v37 = vpop.f32.mrf.mxu0 }
 0xad3   :  { %v1080_v38 = vmax.f32 %v1076_v36, 0.0  ;;  %v1071_v39 = vadd.f32 %v1070_v37, %v2776_v21 }
 0xad5   :  { %v1079_v40 = vmax.f32 %v1071_v39, 0.0  ;;  %v1082_v41 = vadd.f32 %v1080_v38, %v922_v30 }
 0xad7   :  { %v1086_v42 = vsel %vm261_vm1, %v1082_v41, 0.0  ;;  %v1081_v43 = vadd.f32 %v1079_v40, %v921_v29 }
 0xad8   :  { %1087 = vadd.xlane.f32.xlu1 %v1086_v42 }
 0xad9   :  { %v1083_v44 = vsel %vm261_vm1, %v1081_v43, 0.0 }
 0xada   :  { %1084 = vadd.xlane.f32.xlu0 %v1083_v44 }
 0xb61   :  { %v1088_v45 = vpop.xlane.xlu1 %1087 }
 0xb62   :  { %v1090_v46 = vmul.f32 0.03125, %v1088_v45 }
 0xb63   :  { %v1085_v47 = vpop.xlane.xlu0 %1084 }
 0xb64   :  { %v1092_v48 = vsub.f32 %v1082_v41, %v1090_v46  ;;  %v1089_v49 = vmul.f32 0.03125, %v1085_v47 }
 0xb66   :  { %v1091_v50 = vsub.f32 %v1081_v43, %v1089_v49  ;;  %v1094_v51 = vmul.f32 %v1092_v48, %v1092_v48 }
 0xb68   :  { %v1098_v52 = vsel %vm261_vm1, %v1094_v51, 0.0  ;;  %v1093_v53 = vmul.f32 %v1091_v50, %v1091_v50 }
 0xb69   :  { %1099 = vadd.xlane.f32.xlu1 %v1098_v52 }
 0xb6a   :  { %v1095_v57 = vsel %vm261_vm1, %v1093_v53, 0.0 }
 0xb6b   :  { %1096 = vadd.xlane.f32.xlu0 %v1095_v57 }
 0xbf2   :  { %v1100_v58 = vpop.xlane.xlu1 %1099 }
 0xbf3   :  { %v1102_v63 = vmul.f32 0.03125, %v1100_v58 }
 0xbf4   :  { %v1097_v0 = vpop.xlane.xlu0 %1096 }
 0xbf5   :  { %v1104_v1 = vadd.f32 1e-06, %v1102_v63  ;;  %v1101_v2 = vmul.f32 0.03125, %v1097_v0 }
 0xbf7   :  { %2472 = vrsqrt.f32 %v1104_v1  ;;  %v1103_v3 = vadd.f32 1e-06, %v1101_v2 }
 0xbf9   :  { %2474 = vrsqrt.f32 %v1103_v3 }
 0xc04   :  { %v2473_v4 = vpop.eup %2472 }
 0xc05   :  { %v1108_v5 = vmul.f32 %v2473_v4, %v1092_v48 }
 0xc06   :  { %v2475_v6 = vpop.eup %2474 }
 0xc07   :  { %v1107_v7 = vmul.f32 %v2475_v6, %v1091_v50  ;;  %v1110_v8 = vmul.f32 %v1108_v5, %v2710_v55 }
 0xc09   :  { %v1109_v9 = vmul.f32 %v1107_v7, %v2710_v55  ;;  %v1112_v11 = vadd.f32 %v1110_v8, %v2712_v56 }
 0xc0b   :  { %v1111_v10 = vadd.f32 %v1109_v9, %v2712_v56 }
 0xc0d   :  { %2375 = vmatprep.mubr.msk.f32.mxu0 %vm261_vm1, %v1111_v10 }
 0xc0e   :  { %2376 = vmatmul.mubr.msk.f32.vlgmr.msra.gmra.mxu0 %vm261_vm1, %v1112_v11 }
 0xc0f   :  { %2400 = vmatprep.mubr.msk.f32.mxu0 %vm426_vm2, %v2770_v17 }
 0xcce   :  { %v2377_v12 = vpop.f32.mrf.mxu0 }
 0xccf   :  { %v1191_v13 = vadd.f32 %v2377_v12, %v2708_v54 }
 0xcd0   :  { %v1185_v14 = vpop.f32.mrf.mxu0 }
 0xcd1   :  { %v1186_v15 = vadd.f32 %v1185_v14, %v2708_v54  ;;  %2378 = vmatprep.subr.mxu1 %v1191_v13 }
 0xcd2   :  { %2379 = vmatpush3.msra.mxu1 %v1191_v13 }
 0xcd3   :  { %2380 = vmatprep.subr.mxu1 %v1186_v15 }
 0xcd4   :  { %2381 = vmatpush3.msra.mxu1 %v1186_v15 }
 0xcd5   :  { %2383 = vmatmul.mubr.msk.f32.vlgmr.msra.gmra.mxu1 %vm426_vm2, %v2783_v26  ;;  %2385 = vmatprep.subr.mxu1 %v2723_v59 }
 0xcd6   :  { %2386 = vmatpush3.msra.mxu1 %v2723_v59 }
 0xcd7   :  { %2387 = vmatprep.subr.mxu1 %v2731_v60 }
 0xcd8   :  { %2388 = vmatpush3.msra.mxu1 %v2731_v60 }
 0xcd9   :  { %2389 = vmatprep.subr.mxu1 %v2737_v61 }
 0xcda   :  { %2390 = vmatpush3.msra.mxu1 %v2737_v61 }
 0xcdb   :  { %2391 = vmatprep.subr.mxu1 %v2744_v62 }
 0xcdc   :  { %2392 = vmatpush3.msra.mxu1 %v2744_v62 }
 0xd95   :  { %v2384_v16 = vpop.f32.mrf.mxu1 }
 0xd96   :  { %v1266_v18 = vadd.f32 %v2384_v16, %v2774_v19 }
 0xd97   :  { %v1260_v20 = vpop.f32.mrf.mxu1 }
 0xd98   :  { %v1270_v22 = vmax.f32 %v1266_v18, 0.0  ;;  %v1261_v23 = vadd.f32 %v1260_v20, %v2776_v21 }
 0xd9a   :  { %v1269_v24 = vmax.f32 %v1261_v23, 0.0  ;;  %v1272_v25 = vadd.f32 %v1270_v22, %v1112_v11 }
 0xd9c   :  { %v1276_v27 = vsel %vm261_vm1, %v1272_v25, 0.0  ;;  %v1271_v28 = vadd.f32 %v1269_v24, %v1111_v10 }
 0xd9d   :  { %1277 = vadd.xlane.f32.xlu1 %v1276_v27 }
 0xd9e   :  { %v1273_v29 = vsel %vm261_vm1, %v1271_v28, 0.0 }
 0xd9f   :  { %1274 = vadd.xlane.f32.xlu0 %v1273_v29 }
 0xe26   :  { %v1278_v30 = vpop.xlane.xlu1 %1277 }
 0xe27   :  { %v1280_v31 = vmul.f32 0.03125, %v1278_v30 }
 0xe28   :  { %v1275_v32 = vpop.xlane.xlu0 %1274 }
 0xe29   :  { %v1282_v33 = vsub.f32 %v1272_v25, %v1280_v31  ;;  %v1279_v34 = vmul.f32 0.03125, %v1275_v32 }
 0xe2b   :  { %v1281_v35 = vsub.f32 %v1271_v28, %v1279_v34  ;;  %v1284_v36 = vmul.f32 %v1282_v33, %v1282_v33 }
 0xe2d   :  { %v1288_v37 = vsel %vm261_vm1, %v1284_v36, 0.0  ;;  %v1283_v38 = vmul.f32 %v1281_v35, %v1281_v35 }
 0xe2e   :  { %1289 = vadd.xlane.f32.xlu1 %v1288_v37 }
 0xe2f   :  { %v1285_v39 = vsel %vm261_vm1, %v1283_v38, 0.0 }
 0xe30   :  { %1286 = vadd.xlane.f32.xlu0 %v1285_v39 }
 0xeb7   :  { %v1290_v40 = vpop.xlane.xlu1 %1289 }
 0xeb8   :  { %v1292_v41 = vmul.f32 0.03125, %v1290_v40 }
 0xeb9   :  { %v1287_v42 = vpop.xlane.xlu0 %1286 }
 0xeba   :  { %v1294_v43 = vadd.f32 1e-06, %v1292_v41  ;;  %v1291_v44 = vmul.f32 0.03125, %v1287_v42 }
 0xebc   :  { %2476 = vrsqrt.f32 %v1294_v43  ;;  %v1293_v45 = vadd.f32 1e-06, %v1291_v44 }
 0xebe   :  { %2478 = vrsqrt.f32 %v1293_v45 }
 0xec9   :  { %v2477_v46 = vpop.eup %2476 }
 0xeca   :  { %v1298_v47 = vmul.f32 %v2477_v46, %v1282_v33 }
 0xecb   :  { %v2479_v48 = vpop.eup %2478 }
 0xecc   :  { %v1297_v49 = vmul.f32 %v2479_v48, %v1281_v35  ;;  %v1300_v50 = vmul.f32 %v1298_v47, %v2710_v55 }
 0xece   :  { %v1299_v51 = vmul.f32 %v1297_v49, %v2710_v55  ;;  %v1302_v53 = vadd.f32 %v1300_v50, %v2712_v56 }
 0xed0   :  { %v1301_v52 = vadd.f32 %v1299_v51, %v2712_v56 }
 0xed2   :  { %2393 = vmatprep.mubr.msk.f32.mxu1 %vm261_vm1, %v1301_v52 }
 0xed3   :  { %2394 = vmatmul.mubr.msk.f32.vlgmr.msra.gmra.mxu1 %vm261_vm1, %v1302_v53 }
 0xed4   :  { %2418 = vmatprep.mubr.msk.f32.mxu1 %vm426_vm2, %v2770_v17 }
 0xf93   :  { %v2395_v57 = vpop.f32.mrf.mxu1 }
 0xf94   :  { %v1381_v58 = vadd.f32 %v2395_v57, %v2708_v54 }
 0xf95   :  { %v1375_v63 = vpop.f32.mrf.mxu1 }
 0xf96   :  { %v1376_v0 = vadd.f32 %v1375_v63, %v2708_v54  ;;  %2396 = vmatprep.subr.mxu0 %v1381_v58 }
 0xf97   :  { %2397 = vmatpush3.msra.mxu0 %v1381_v58 }
 0xf98   :  { %2398 = vmatprep.subr.mxu0 %v1376_v0 }
 0xf99   :  { %2399 = vmatpush3.msra.mxu0 %v1376_v0 }
 0xf9a   :  { %2401 = vmatmul.mubr.msk.f32.vlgmr.msra.gmra.mxu0 %vm426_vm2, %v2783_v26  ;;  %2403 = vmatprep.subr.mxu0 %v2723_v59 }
 0xf9b   :  { %2404 = vmatpush3.msra.mxu0 %v2723_v59 }
 0xf9c   :  { %2405 = vmatprep.subr.mxu0 %v2731_v60 }
 0xf9d   :  { %2406 = vmatpush3.msra.mxu0 %v2731_v60 }
 0xf9e   :  { %2407 = vmatprep.subr.mxu0 %v2737_v61 }
 0xf9f   :  { %2408 = vmatpush3.msra.mxu0 %v2737_v61 }
 0xfa0   :  { %2409 = vmatprep.subr.mxu0 %v2744_v62 }
 0xfa1   :  { %2410 = vmatpush3.msra.mxu0 %v2744_v62 }
0x105a   :  { %v2402_v1 = vpop.f32.mrf.mxu0 }
0x105b   :  { %v1456_v2 = vadd.f32 %v2402_v1, %v2774_v19 }
0x105c   :  { %v1450_v3 = vpop.f32.mrf.mxu0 }
0x105d   :  { %v1460_v4 = vmax.f32 %v1456_v2, 0.0  ;;  %v1451_v5 = vadd.f32 %v1450_v3, %v2776_v21 }
0x105f   :  { %v1459_v6 = vmax.f32 %v1451_v5, 0.0  ;;  %v1462_v7 = vadd.f32 %v1460_v4, %v1302_v53 }
0x1061   :  { %v1466_v8 = vsel %vm261_vm1, %v1462_v7, 0.0  ;;  %v1461_v9 = vadd.f32 %v1459_v6, %v1301_v52 }
0x1062   :  { %1467 = vadd.xlane.f32.xlu1 %v1466_v8 }
0x1063   :  { %v1463_v10 = vsel %vm261_vm1, %v1461_v9, 0.0 }
0x1064   :  { %1464 = vadd.xlane.f32.xlu0 %v1463_v10 }
0x10eb   :  { %v1468_v11 = vpop.xlane.xlu1 %1467 }
0x10ec   :  { %v1470_v12 = vmul.f32 0.03125, %v1468_v11 }
0x10ed   :  { %v1465_v13 = vpop.xlane.xlu0 %1464 }
0x10ee   :  { %v1472_v14 = vsub.f32 %v1462_v7, %v1470_v12  ;;  %v1469_v15 = vmul.f32 0.03125, %v1465_v13 }
0x10f0   :  { %v1471_v16 = vsub.f32 %v1461_v9, %v1469_v15  ;;  %v1474_v18 = vmul.f32 %v1472_v14, %v1472_v14 }
0x10f2   :  { %v1478_v20 = vsel %vm261_vm1, %v1474_v18, 0.0  ;;  %v1473_v22 = vmul.f32 %v1471_v16, %v1471_v16 }
0x10f3   :  { %1479 = vadd.xlane.f32.xlu1 %v1478_v20 }
0x10f4   :  { %v1475_v23 = vsel %vm261_vm1, %v1473_v22, 0.0 }
0x10f5   :  { %1476 = vadd.xlane.f32.xlu0 %v1475_v23 }
0x117c   :  { %v1480_v24 = vpop.xlane.xlu1 %1479 }
0x117d   :  { %v1482_v25 = vmul.f32 0.03125, %v1480_v24 }
0x117e   :  { %v1477_v27 = vpop.xlane.xlu0 %1476 }
0x117f   :  { %v1484_v28 = vadd.f32 1e-06, %v1482_v25  ;;  %v1481_v29 = vmul.f32 0.03125, %v1477_v27 }
0x1181   :  { %2480 = vrsqrt.f32 %v1484_v28  ;;  %v1483_v30 = vadd.f32 1e-06, %v1481_v29 }
0x1183   :  { %2482 = vrsqrt.f32 %v1483_v30 }
0x118e   :  { %v2481_v31 = vpop.eup %2480 }
0x118f   :  { %v1488_v32 = vmul.f32 %v2481_v31, %v1472_v14 }
0x1190   :  { %v2483_v33 = vpop.eup %2482 }
0x1191   :  { %v1487_v34 = vmul.f32 %v2483_v33, %v1471_v16  ;;  %v1490_v35 = vmul.f32 %v1488_v32, %v2710_v55 }
0x1193   :  { %v1489_v36 = vmul.f32 %v1487_v34, %v2710_v55  ;;  %v1492_v38 = vadd.f32 %v1490_v35, %v2712_v56 }
0x1195   :  { %v1491_v37 = vadd.f32 %v1489_v36, %v2712_v56 }
0x1197   :  { %2411 = vmatprep.mubr.msk.f32.mxu0 %vm261_vm1, %v1491_v37 }
0x1198   :  { %2412 = vmatmul.mubr.msk.f32.vlgmr.msra.gmra.mxu0 %vm261_vm1, %v1492_v38 }
0x1199   :  { %2436 = vmatprep.mubr.msk.f32.mxu0 %vm426_vm2, %v2770_v17 }
0x1258   :  { %v2413_v39 = vpop.f32.mrf.mxu0 }
0x1259   :  { %v1571_v40 = vadd.f32 %v2413_v39, %v2708_v54 }
0x125a   :  { %v1565_v41 = vpop.f32.mrf.mxu0 }
0x125b   :  { %v1566_v42 = vadd.f32 %v1565_v41, %v2708_v54  ;;  %2414 = vmatprep.subr.mxu1 %v1571_v40 }
0x125c   :  { %2415 = vmatpush3.msra.mxu1 %v1571_v40 }
0x125d   :  { %2416 = vmatprep.subr.mxu1 %v1566_v42 }
0x125e   :  { %2417 = vmatpush3.msra.mxu1 %v1566_v42 }
0x125f   :  { %2419 = vmatmul.mubr.msk.f32.vlgmr.msra.gmra.mxu1 %vm426_vm2, %v2783_v26  ;;  %2421 = vmatprep.subr.mxu1 %v2723_v59 }
0x1260   :  { %2422 = vmatpush3.msra.mxu1 %v2723_v59 }
0x1261   :  { %2423 = vmatprep.subr.mxu1 %v2731_v60 }
0x1262   :  { %2424 = vmatpush3.msra.mxu1 %v2731_v60 }
0x1263   :  { %2425 = vmatprep.subr.mxu1 %v2737_v61 }
0x1264   :  { %2426 = vmatpush3.msra.mxu1 %v2737_v61 }
0x1265   :  { %2427 = vmatprep.subr.mxu1 %v2744_v62 }
0x1266   :  { %2428 = vmatpush3.msra.mxu1 %v2744_v62 }
0x131f   :  { %v2420_v43 = vpop.f32.mrf.mxu1 }
0x1320   :  { %v1646_v44 = vadd.f32 %v2420_v43, %v2774_v19 }
0x1321   :  { %v1640_v45 = vpop.f32.mrf.mxu1 }
0x1322   :  { %v1650_v46 = vmax.f32 %v1646_v44, 0.0  ;;  %v1641_v47 = vadd.f32 %v1640_v45, %v2776_v21 }
0x1324   :  { %v1649_v48 = vmax.f32 %v1641_v47, 0.0  ;;  %v1652_v49 = vadd.f32 %v1650_v46, %v1492_v38 }
0x1326   :  { %v1656_v50 = vsel %vm261_vm1, %v1652_v49, 0.0  ;;  %v1651_v51 = vadd.f32 %v1649_v48, %v1491_v37 }
0x1327   :  { %1657 = vadd.xlane.f32.xlu1 %v1656_v50 }
0x1328   :  { %v1653_v52 = vsel %vm261_vm1, %v1651_v51, 0.0 }
0x1329   :  { %1654 = vadd.xlane.f32.xlu0 %v1653_v52 }
0x13b0   :  { %v1658_v53 = vpop.xlane.xlu1 %1657 }
0x13b1   :  { %v1660_v57 = vmul.f32 0.03125, %v1658_v53 }
0x13b2   :  { %v1655_v58 = vpop.xlane.xlu0 %1654 }
0x13b3   :  { %v1662_v63 = vsub.f32 %v1652_v49, %v1660_v57  ;;  %v1659_v0 = vmul.f32 0.03125, %v1655_v58 }
0x13b5   :  { %v1661_v1 = vsub.f32 %v1651_v51, %v1659_v0  ;;  %v1664_v2 = vmul.f32 %v1662_v63, %v1662_v63 }
0x13b7   :  { %v1668_v3 = vsel %vm261_vm1, %v1664_v2, 0.0  ;;  %v1663_v4 = vmul.f32 %v1661_v1, %v1661_v1 }
0x13b8   :  { %1669 = vadd.xlane.f32.xlu1 %v1668_v3 }
0x13b9   :  { %v1665_v5 = vsel %vm261_vm1, %v1663_v4, 0.0 }
0x13ba   :  { %1666 = vadd.xlane.f32.xlu0 %v1665_v5 }
0x1441   :  { %v1670_v6 = vpop.xlane.xlu1 %1669 }
0x1442   :  { %v1672_v7 = vmul.f32 0.03125, %v1670_v6 }
0x1443   :  { %v1667_v8 = vpop.xlane.xlu0 %1666 }
0x1444   :  { %v1674_v9 = vadd.f32 1e-06, %v1672_v7  ;;  %v1671_v10 = vmul.f32 0.03125, %v1667_v8 }
0x1446   :  { %2484 = vrsqrt.f32 %v1674_v9  ;;  %v1673_v11 = vadd.f32 1e-06, %v1671_v10 }
0x1448   :  { %2486 = vrsqrt.f32 %v1673_v11 }
0x1453   :  { %v2485_v12 = vpop.eup %2484 }
0x1454   :  { %v1678_v13 = vmul.f32 %v2485_v12, %v1662_v63 }
0x1455   :  { %v2487_v14 = vpop.eup %2486 }
0x1456   :  { %v1677_v15 = vmul.f32 %v2487_v14, %v1661_v1  ;;  %v1680_v16 = vmul.f32 %v1678_v13, %v2710_v55 }
0x1458   :  { %v1679_v18 = vmul.f32 %v1677_v15, %v2710_v55  ;;  %v1682_v22 = vadd.f32 %v1680_v16, %v2712_v56 }
0x145a   :  { %v1681_v20 = vadd.f32 %v1679_v18, %v2712_v56 }
0x145c   :  { %2429 = vmatprep.mubr.msk.f32.mxu1 %vm261_vm1, %v1681_v20 }
0x145d   :  { %2430 = vmatmul.mubr.msk.f32.vlgmr.msra.gmra.mxu1 %vm261_vm1, %v1682_v22 }
0x145e   :  { %2454 = vmatprep.mubr.msk.f32.mxu1 %vm426_vm2, %v2770_v17 }
0x151d   :  { %v2431_v23 = vpop.f32.mrf.mxu1 }
0x151e   :  { %v1761_v24 = vadd.f32 %v2431_v23, %v2708_v54 }
0x151f   :  { %v1755_v25 = vpop.f32.mrf.mxu1 }
0x1520   :  { %v1756_v27 = vadd.f32 %v1755_v25, %v2708_v54  ;;  %2432 = vmatprep.subr.mxu0 %v1761_v24 }
0x1521   :  { %2433 = vmatpush3.msra.mxu0 %v1761_v24 }
0x1522   :  { %2434 = vmatprep.subr.mxu0 %v1756_v27 }
0x1523   :  { %2435 = vmatpush3.msra.mxu0 %v1756_v27 }
0x1524   :  { %2437 = vmatmul.mubr.msk.f32.vlgmr.msra.gmra.mxu0 %vm426_vm2, %v2783_v26  ;;  %2439 = vmatprep.subr.mxu0 %v2723_v59 }
0x1525   :  { %2440 = vmatpush3.msra.mxu0 %v2723_v59 }
0x1526   :  { %2441 = vmatprep.subr.mxu0 %v2731_v60 }
0x1527   :  { %2442 = vmatpush3.msra.mxu0 %v2731_v60 }
0x1528   :  { %2443 = vmatprep.subr.mxu0 %v2737_v61 }
0x1529   :  { %2444 = vmatpush3.msra.mxu0 %v2737_v61 }
0x152a   :  { %2445 = vmatprep.subr.mxu0 %v2744_v62 }
0x152b   :  { %2446 = vmatpush3.msra.mxu0 %v2744_v62 }
0x15e4   :  { %v2438_v17 = vpop.f32.mrf.mxu0 }
0x15e5   :  { %v1836_v28 = vadd.f32 %v2438_v17, %v2774_v19 }
0x15e6   :  { %v1830_v29 = vpop.f32.mrf.mxu0 }
0x15e7   :  { %v1840_v30 = vmax.f32 %v1836_v28, 0.0  ;;  %v1831_v31 = vadd.f32 %v1830_v29, %v2776_v21 }
0x15e9   :  { %v1839_v59 = vmax.f32 %v1831_v31, 0.0  ;;  %v1842_v32 = vadd.f32 %v1840_v30, %v1682_v22 }
0x15eb   :  { %v1846_v33 = vsel %vm261_vm1, %v1842_v32, 0.0  ;;  %v1841_v60 = vadd.f32 %v1839_v59, %v1681_v20 }
0x15ec   :  { %1847 = vadd.xlane.f32.xlu1 %v1846_v33 }
0x15ed   :  { %v1843_v34 = vsel %vm261_vm1, %v1841_v60, 0.0 }
0x15ee   :  { %1844 = vadd.xlane.f32.xlu0 %v1843_v34 }
0x1675   :  { %v1848_v61 = vpop.xlane.xlu1 %1847 }
0x1676   :  { %v1850_v35 = vmul.f32 0.03125, %v1848_v61 }
0x1677   :  { %v1845_v36 = vpop.xlane.xlu0 %1844 }
0x1678   :  { %v1852_v62 = vsub.f32 %v1842_v32, %v1850_v35  ;;  %v1849_v37 = vmul.f32 0.03125, %v1845_v36 }
0x167a   :  { %v1851_v38 = vsub.f32 %v1841_v60, %v1849_v37  ;;  %v1854_v39 = vmul.f32 %v1852_v62, %v1852_v62 }
0x167c   :  { %v1858_v40 = vsel %vm261_vm1, %v1854_v39, 0.0  ;;  %v1853_v41 = vmul.f32 %v1851_v38, %v1851_v38 }
0x167d   :  { %1859 = vadd.xlane.f32.xlu1 %v1858_v40 }
0x167e   :  { %v1855_v42 = vsel %vm261_vm1, %v1853_v41, 0.0 }
0x167f   :  { %1856 = vadd.xlane.f32.xlu0 %v1855_v42 }
0x1706   :  { %v1860_v43 = vpop.xlane.xlu1 %1859 }
0x1707   :  { %v1862_v44 = vmul.f32 0.03125, %v1860_v43 }
0x1708   :  { %v1857_v45 = vpop.xlane.xlu0 %1856 }
0x1709   :  { %v1864_v46 = vadd.f32 1e-06, %v1862_v44  ;;  %v1861_v47 = vmul.f32 0.03125, %v1857_v45 }
0x170b   :  { %2488 = vrsqrt.f32 %v1864_v46  ;;  %v1863_v48 = vadd.f32 1e-06, %v1861_v47 }
0x170d   :  { %2490 = vrsqrt.f32 %v1863_v48 }
0x1718   :  { %v2489_v49 = vpop.eup %2488 }
0x1719   :  { %v1868_v50 = vmul.f32 %v2489_v49, %v1852_v62 }
0x171a   :  { %v2491_v51 = vpop.eup %2490 }
0x171b   :  { %v1867_v52 = vmul.f32 %v2491_v51, %v1851_v38  ;;  %v1870_v53 = vmul.f32 %v1868_v50, %v2710_v55 }
0x171d   :  { %v1869_v57 = vmul.f32 %v1867_v52, %v2710_v55  ;;  %v1872_v63 = vadd.f32 %v1870_v53, %v2712_v56 }
0x171f   :  { %v1871_v58 = vadd.f32 %v1869_v57, %v2712_v56 }
0x1721   :  { %2447 = vmatprep.mubr.msk.f32.mxu0 %vm261_vm1, %v1871_v58 }
0x1722   :  { %2448 = vmatmul.mubr.msk.f32.vlgmr.msra.gmra.mxu0 %vm261_vm1, %v1872_v63 }
0x17e2   :  { %v2449_v0 = vpop.f32.mrf.mxu0 }
0x17e3   :  { %v1951_v1 = vadd.f32 %v2449_v0, %v2708_v54 }
0x17e4   :  { %v1945_v2 = vpop.f32.mrf.mxu0 }
0x17e5   :  { %v1946_v3 = vadd.f32 %v1945_v2, %v2708_v54  ;;  %2450 = vmatprep.subr.mxu1 %v1951_v1 }
0x17e6   :  { %2451 = vmatpush3.msra.mxu1 %v1951_v1 }
0x17e7   :  { %2452 = vmatprep.subr.mxu1 %v1946_v3 }
0x17e8   :  { %2453 = vmatpush3.msra.mxu1 %v1946_v3 }
0x17e9   :  { %2455 = vmatmul.mubr.msk.f32.vlgmr.msra.gmra.mxu1 %vm426_vm2, %v2783_v26 }
0x18a9   :  { %v2456_v4 = vpop.f32.mrf.mxu1 }
0x18aa   :  { %v2026_v5 = vadd.f32 %v2456_v4, %v2774_v19 }
0x18ab   :  { %v2020_v6 = vpop.f32.mrf.mxu1 }
0x18ac   :  { %v2030_v7 = vmax.f32 %v2026_v5, 0.0  ;;  %v2021_v8 = vadd.f32 %v2020_v6, %v2776_v21 }
0x18ae   :  { %v2029_v9 = vmax.f32 %v2021_v8, 0.0  ;;  %v2032_v10 = vadd.f32 %v2030_v7, %v1872_v63 }
0x18b0   :  { %v2036_v11 = vsel %vm261_vm1, %v2032_v10, 0.0  ;;  %v2031_v12 = vadd.f32 %v2029_v9, %v1871_v58 }
0x18b1   :  { %2037 = vadd.xlane.f32.xlu1 %v2036_v11 }
0x18b2   :  { %v2033_v54 = vsel %vm261_vm1, %v2031_v12, 0.0 }
0x18b3   :  { %2034 = vadd.xlane.f32.xlu0 %v2033_v54 }
0x193a   :  { %v2038_v13 = vpop.xlane.xlu1 %2037 }
0x193b   :  { %v2040_v14 = vmul.f32 0.03125, %v2038_v13 }
0x193c   :  { %v2035_v15 = vpop.xlane.xlu0 %2034 }
0x193d   :  { %v2042_v26 = vsub.f32 %v2032_v10, %v2040_v14  ;;  %v2039_v16 = vmul.f32 0.03125, %v2035_v15 }
0x193f   :  { %v2041_v18 = vsub.f32 %v2031_v12, %v2039_v16  ;;  %v2044_v19 = vmul.f32 %v2042_v26, %v2042_v26 }
0x1941   :  { %v2048_v20 = vsel %vm261_vm1, %v2044_v19, 0.0  ;;  %v2043_v22 = vmul.f32 %v2041_v18, %v2041_v18 }
0x1942   :  { %2049 = vadd.xlane.f32.xlu1 %v2048_v20 }
0x1943   :  { %v2045_v21 = vsel %vm261_vm1, %v2043_v22, 0.0 }
0x1944   :  { %2046 = vadd.xlane.f32.xlu0 %v2045_v21 }
0x19cb   :  { %v2050_v23 = vpop.xlane.xlu1 %2049 }
0x19cc   :  { %v2052_v24 = vmul.f32 0.03125, %v2050_v23 }
0x19cd   :  { %v2047_v25 = vpop.xlane.xlu0 %2046 }
0x19ce   :  { %v2054_v27 = vadd.f32 1e-06, %v2052_v24  ;;  %v2051_v17 = vmul.f32 0.03125, %v2047_v25 }
0x19d0   :  { %2492 = vrsqrt.f32 %v2054_v27  ;;  %v2053_v28 = vadd.f32 1e-06, %v2051_v17 }
0x19d2   :  { %2494 = vrsqrt.f32 %v2053_v28 }
0x19dd   :  { %v2493_v29 = vpop.eup %2492 }
0x19de   :  { %v2058_v30 = vmul.f32 %v2493_v29, %v2042_v26 }
0x19df   :  { %v2495_v31 = vpop.eup %2494 }
0x19e0   :  { %v2057_v59 = vmul.f32 %v2495_v31, %v2041_v18  ;;  %v2060_v32 = vmul.f32 %v2058_v30, %v2710_v55 }
0x19e2   :  { %v2059_v33 = vmul.f32 %v2057_v59, %v2710_v55  ;;  %v2062_v60 = vadd.f32 %v2060_v32, %v2712_v56 }
0x19e4   :  { %v2061_v34 = vadd.f32 %v2059_v33, %v2712_v56  ;;  %2064 = vst.msk [vmem:[#allocation2 + $0x8] sm:$0xff] %vm261_vm1, %v2062_v60 }
0x19e6   :  { %2063 = vst.msk [vmem:[#allocation2] sm:$0xff] %vm261_vm1, %v2061_v34 }
0x19e7   :  { %2507 = shalt.err (!%p2504_p4)
}
0x19e8   :  { %s2519_s23 = smov 128   ;;  %s2520_s1 = smov 8  }
0x19e9   :  { %2076 = dma.vmem_to_hbm [thread:$0]  %s2071_s21, 256, %s3008_s7, [#allocation3], %s2519_s23, %s2519_s23, %s2520_s1  }
0x19ea   :  { %2516 = dma.done.wait [#allocation3], 256  }
0x19eb   :  { %2517 = vsyncadd [#allocation3], 4294967040 }
0x19ec   :  { %2080 = vsyncpa [#allocation3], 1 }

</bundles_post_ra>
